<compile_context>
chip_gen: v5e
topology: v5e:2x2
jax: 0.10.0
libtpu: 0.0.40
codegen_flags: <defaults>
</compile_context>

<pallas_src>
import functools

import jax
import jax.numpy as jnp
from jax import lax
from jax.experimental import pallas as pl
from jax.experimental.pallas import tpu as pltpu


def _lstm_decoder_kernel(tgt_ref, enc_ref, nmask_ref, w_att_ref, w_x_ref,
                         w_feed_ref, w_h_ref, b_ref, w_oa_ref, w_ob_ref,
                         out_ref, h_sc, c_sc, prev_sc, *,
                         num_layers, tgt_len, scale, eps, fix_norm,
                         matmul_dtype):
    f32 = jnp.float32
    md = matmul_dtype

    enc = enc_ref[...]          # (TB, S, E) matmul dtype (attention keys+values)
    nmask = nmask_ref[...]      # (TB, 1, S) f32 additive mask (0 / -1e9)

    # Per-batch-tile state init (scratch persists across grid iterations).
    h_sc[...] = jnp.zeros_like(h_sc)
    c_sc[...] = jnp.zeros_like(c_sc)
    prev_sc[...] = jnp.zeros_like(prev_sc)

    @pl.loop(0, tgt_len)
    def _step(t):
        x_t = tgt_ref[t]                          # (TB, E) md, dense slab load
        prev = prev_sc[...].astype(md)            # (TB, E) feed-input

        layer_in = x_t
        for l in range(num_layers):
            h_l = h_sc[l]                         # (TB, E) f32
            c_l = c_sc[l]
            h_md = h_l.astype(md)

            gate_pre = []
            for g in range(4):                    # PyTorch gate order: i, f, g, o
                idx = l * 4 + g
                acc = jnp.dot(layer_in, w_x_ref[idx],
                              preferred_element_type=f32)
                if l == 0:
                    acc = acc + jnp.dot(prev, w_feed_ref[g],
                                        preferred_element_type=f32)
                acc = acc + jnp.dot(h_md, w_h_ref[idx],
                                    preferred_element_type=f32)
                gate_pre.append(acc + b_ref[idx])          # (TB, E) f32

            i_g = jax.nn.sigmoid(gate_pre[0])
            f_g = jax.nn.sigmoid(gate_pre[1])
            g_g = jnp.tanh(gate_pre[2])
            o_g = jax.nn.sigmoid(gate_pre[3])

            c_new = f_g * c_l + i_g * g_g
            h_new = o_g * jnp.tanh(c_new)
            h_sc[l] = h_new
            c_sc[l] = c_new
            layer_in = h_new.astype(md)           # next layer's input

        x = layer_in                              # (TB, E) md, top hidden

        # Bilinear attention.  att[b,s] = <x[b] @ W_att, enc[b,s]>, identical
        # to torch.bmm(q, proj_k(enc)) in the PyTorch module.
        q = jnp.dot(x, w_att_ref[...], preferred_element_type=f32)    # (TB, E)
        q3 = q.astype(md)[:, None, :]                                  # (TB,1,E)
        att = jnp.einsum('bqe,bse->bqs', q3, enc,
                         preferred_element_type=f32)                   # (TB,1,S)
        att = att + nmask
        att = att - jnp.max(att, axis=-1, keepdims=True)
        ex = jnp.exp(att)
        p = ex * pl.reciprocal(jnp.sum(ex, axis=-1, keepdims=True), approx=True)
        ctx = jnp.einsum('bqs,bse->bqe', p.astype(md), enc,
                         preferred_element_type=f32)[:, 0, :]           # (TB, E)

        # Output projection: split weights instead of concatenating [x, ctx].
        h_tilde = jnp.tanh(
            jnp.dot(x, w_oa_ref[...], preferred_element_type=f32)
            + jnp.dot(ctx.astype(md), w_ob_ref[...], preferred_element_type=f32))
        prev_sc[...] = h_tilde                     # feed-input (un-normalized)

        out_val = h_tilde
        if fix_norm:
            # ScaleNorm: x * scale / max(||x||, eps) == x * scale * rsqrt(max(ssq, eps^2))
            ssq = jnp.sum(out_val * out_val, axis=-1, keepdims=True)
            out_val = out_val * (scale * lax.rsqrt(jnp.maximum(ssq, eps * eps)))
        out_ref[t] = out_val.astype(out_ref.dtype)   # dense (TB, E) store


def _round_up(x, m):
    return -(-x // m) * m


def _default_batch_tile(batch):
    """Batch rows per grid step: fill MXU rows (cap 128 keeps VMEM modest on
    v5e/v6e/v7x) and, when possible, keep >= 2 grid steps so
    dimension_semantics=("parallel",) can shard across v7x's two TensorCores."""
    bp = _round_up(max(int(batch), 1), 8)
    tb = min(bp, 128)
    if tb == bp and bp >= 16:
        tb = max(8, (bp // 2 // 8) * 8)
    return tb


def lstm_decoder_forward(tgt_inputs, encoder_out, encoder_mask, w_att,
                         w_ih_list, w_hh_list, b_ih_list, b_hh_list, w_out,
                         *, fix_norm=True, eps=1e-5, batch_tile=None,
                         matmul_dtype=jnp.bfloat16,
                         vmem_limit_bytes=48 * 1024 * 1024):
    """Pallas-TPU forward of LSTMDecoder (eval mode: dropouts are identity).

    Weights are in PyTorch layout: w_att (E,E), w_out (E,2E),
    w_ih_list[0] (4E,2E), w_ih_list[l>0] (4E,E), w_hh_list[l] (4E,E),
    b_ih_list[l]/b_hh_list[l] (4E,).
    """
    B, T, E = tgt_inputs.shape
    S = encoder_out.shape[1]
    L = len(w_ih_list)
    scale = float(E) ** 0.5            # ScaleNorm(scale=embed_dim**0.5)
    md = matmul_dtype

    # ---- host-side weight prep: per-gate split, (in,out) transpose, cast ----
    def gate_split_t(w):               # (4E, K) -> [(K, E)] * 4   (i, f, g, o)
        return [w[g * E:(g + 1) * E, :].T for g in range(4)]

    w_x_blocks, w_h_blocks, b_blocks = [], [], []
    w_feed_blocks = gate_split_t(w_ih_list[0][:, E:2 * E])  # feed-input, layer 0
    for l in range(L):
        w_in = w_ih_list[l][:, :E] if l == 0 else w_ih_list[l]
        w_x_blocks += gate_split_t(w_in)
        w_h_blocks += gate_split_t(w_hh_list[l])
        bsum = (b_ih_list[l] + b_hh_list[l]).astype(jnp.float32)
        b_blocks += [bsum[g * E:(g + 1) * E][None, :] for g in range(4)]

    w_x = jnp.stack(w_x_blocks).astype(md)           # (4L, E, E)
    w_h = jnp.stack(w_h_blocks).astype(md)           # (4L, E, E)
    w_feed = jnp.stack(w_feed_blocks).astype(md)     # (4,  E, E)
    bias = jnp.stack(b_blocks)                       # (4L, 1, E) f32
    w_att_m = jnp.asarray(w_att).astype(md)          # (E, E): used as x @ W
    w_oa = jnp.asarray(w_out)[:, :E].T.astype(md)    # (E, E): x part
    w_ob = jnp.asarray(w_out)[:, E:].T.astype(md)    # (E, E): context part

    # ---- batch tiling / padding ----
    TB = int(batch_tile) if batch_tile is not None else _default_batch_tile(B)
    Bp = _round_up(B, TB)

    tgt_t = jnp.swapaxes(tgt_inputs, 0, 1)           # (T, B, E) time-major
    enc = encoder_out
    mask = encoder_mask
    if Bp != B:
        pad = Bp - B
        tgt_t = jnp.pad(tgt_t, ((0, 0), (0, pad), (0, 0)))
        enc = jnp.pad(enc, ((0, pad), (0, 0), (0, 0)))
        mask = jnp.pad(mask, ((0, pad), (0, 0), (0, 0)))
    tgt_t = tgt_t.astype(md)
    enc = enc.astype(md)
    nmask = mask.astype(jnp.float32) * jnp.float32(-1e9)   # additive mask

    kernel = functools.partial(
        _lstm_decoder_kernel, num_layers=L, tgt_len=T, scale=scale, eps=eps,
        fix_norm=fix_norm, matmul_dtype=md)

    cp_kwargs = dict(dimension_semantics=("parallel",))
    if vmem_limit_bytes is not None:
        cp_kwargs["vmem_limit_bytes"] = int(vmem_limit_bytes)

    out_t = pl.pallas_call(
        kernel,
        out_shape=jax.ShapeDtypeStruct((T, Bp, E), jnp.float32),
        grid=(Bp // TB,),
        in_specs=[
            pl.BlockSpec((T, TB, E), lambda i: (0, i, 0)),       # tgt (time-major)
            pl.BlockSpec((TB, S, E), lambda i: (i, 0, 0)),       # encoder_out
            pl.BlockSpec((TB, 1, S), lambda i: (i, 0, 0)),       # additive mask
            pl.BlockSpec((E, E), lambda i: (0, 0)),              # w_att
            pl.BlockSpec((4 * L, E, E), lambda i: (0, 0, 0)),    # w_x  (per gate)
            pl.BlockSpec((4, E, E), lambda i: (0, 0, 0)),        # w_feed (per gate)
            pl.BlockSpec((4 * L, E, E), lambda i: (0, 0, 0)),    # w_h  (per gate)
            pl.BlockSpec((4 * L, 1, E), lambda i: (0, 0, 0)),    # bias (per gate)
            pl.BlockSpec((E, E), lambda i: (0, 0)),              # w_out (x part)
            pl.BlockSpec((E, E), lambda i: (0, 0)),              # w_out (ctx part)
        ],
        out_specs=pl.BlockSpec((T, TB, E), lambda i: (0, i, 0)),
        scratch_shapes=[
            pltpu.VMEM((L, TB, E), jnp.float32),    # h
            pltpu.VMEM((L, TB, E), jnp.float32),    # c
            pltpu.VMEM((TB, E), jnp.float32),       # prev_h_tilde
        ],
        compiler_params=pltpu.CompilerParams(**cp_kwargs),
    )(tgt_t, enc, nmask, w_att_m, w_x, w_feed, w_h, bias, w_oa, w_ob)

    return jnp.swapaxes(out_t, 0, 1)[:B]             # (B, T, E)


def lstm_decoder_reference(tgt_inputs, encoder_out, encoder_mask, w_att,
                           w_ih_list, w_hh_list, b_ih_list, b_hh_list, w_out,
                           *, fix_norm=True, eps=1e-5):
    """Pure-JAX mirror of the PyTorch forward (eval mode)."""
    P = jax.lax.Precision.HIGHEST
    B, T, E = tgt_inputs.shape
    L = len(w_ih_list)
    h = jnp.zeros((L, B, E), jnp.float32)
    c = jnp.zeros((L, B, E), jnp.float32)
    prev = jnp.zeros((B, 1, E), jnp.float32)
    projk = jnp.einsum("bsk,ek->bse", encoder_out, w_att, precision=P)
    enc_k = jnp.swapaxes(projk, 1, 2)  # (B, E, S)
    outs = []
    for t in range(T):
        x = tgt_inputs[:, t:t + 1, :]
        layer_in = jnp.concatenate([x, prev], axis=-1)[:, 0, :]  # (B, 2E)
        new_h, new_c = [], []
        for l in range(L):
            gates = (jnp.dot(layer_in, w_ih_list[l].T, precision=P)
                     + jnp.dot(h[l], w_hh_list[l].T, precision=P)
                     + b_ih_list[l] + b_hh_list[l])
            i = jax.nn.sigmoid(gates[:, :E])
            f = jax.nn.sigmoid(gates[:, E:2 * E])
            g = jnp.tanh(gates[:, 2 * E:3 * E])
            o = jax.nn.sigmoid(gates[:, 3 * E:])
            cn = f * c[l] + i * g
            hn = o * jnp.tanh(cn)
            new_h.append(hn)
            new_c.append(cn)
            layer_in = hn
        h = jnp.stack(new_h)
        c = jnp.stack(new_c)
        x = new_h[-1][:, None, :]                                 # (B, 1, E)
        att = jnp.einsum("bqe,bes->bqs", x, enc_k, precision=P)
        att = jnp.where(encoder_mask, -1e9, att)
        att = jax.nn.softmax(att, axis=-1)
        context = jnp.einsum("bqs,bse->bqe", att, encoder_out, precision=P)
        xc = jnp.concatenate([x, context], axis=-1)
        x = jnp.tanh(jnp.einsum("bqk,ek->bqe", xc, w_out, precision=P))
        prev = x
        outs.append(x)
    out = jnp.concatenate(outs, axis=1)
    if fix_norm:
        norm = jnp.maximum(jnp.linalg.norm(out, axis=-1, keepdims=True), eps)
        out = out * (E ** 0.5 / norm)
    return out


if __name__ == "__main__":
    B, T, S, E, L = 2, 8, 16, 32, 2

    key = jax.random.PRNGKey(0)
    ks = jax.random.split(key, 12)

    def u(k, shape):
        return jax.random.uniform(k, shape, jnp.float32, -0.01, 0.01)

    tgt = jax.random.normal(ks[0], (B, T, E), jnp.float32)
    enc = jax.random.normal(ks[1], (B, S, E), jnp.float32)
    valid_len = jnp.array([S, S - 4])
    encoder_mask = jnp.arange(S)[None, None, :] >= valid_len[:, None, None]  # (B,1,S)

    # nn.init.uniform_(-0.01, 0.01) on every parameter (deterministic here)
    w_att = u(ks[2], (E, E))
    w_out = u(ks[3], (E, 2 * E))
    w_ih_list = [u(ks[4], (4 * E, 2 * E)), u(ks[5], (4 * E, E))]
    w_hh_list = [u(ks[6], (4 * E, E)), u(ks[7], (4 * E, E))]
    b_ih_list = [u(ks[8], (4 * E,)), u(ks[9], (4 * E,))]
    b_hh_list = [u(ks[10], (4 * E,)), u(ks[11], (4 * E,))]

    ref = lstm_decoder_reference(tgt, enc, encoder_mask, w_att, w_ih_list,
                                 w_hh_list, b_ih_list, b_hh_list, w_out,
                                 fix_norm=True)

    # f32-MXU path: tight numerical check against the HIGHEST-precision ref
    # (only divergence is the approx softmax reciprocal).
    out_f32 = jax.block_until_ready(
        lstm_decoder_forward(tgt, enc, encoder_mask, w_att, w_ih_list,
                             w_hh_list, b_ih_list, b_hh_list, w_out,
                             fix_norm=True, matmul_dtype=jnp.float32))
    assert out_f32.shape == (B, T, E)
    if not jnp.allclose(out_f32, ref, atol=5e-3, rtol=5e-3):
        raise AssertionError("f32 Pallas kernel does not match JAX reference")

    # bf16-MXU path (recommended production config): looser tolerance.
    out_bf16 = jax.block_until_ready(
        lstm_decoder_forward(tgt, enc, encoder_mask, w_att, w_ih_list,
                             w_hh_list, b_ih_list, b_hh_list, w_out,
                             fix_norm=True, matmul_dtype=jnp.bfloat16))
    assert out_bf16.shape == (B, T, E)
    if not jnp.allclose(out_bf16, ref, atol=8e-2, rtol=8e-2):
        raise AssertionError("bf16 Pallas kernel deviates too far from reference")

    print("KERNEL_OK")
</pallas_src>

<mosaic_0001>
module attributes {stable_mosaic.version = 11 : i64} {
  func.func @_lstm_decoder_kernel(%arg0: i32, %arg1: memref<8x8x32xf32, #tpu.memory_space<vmem>>, %arg2: memref<8x16x32xf32, #tpu.memory_space<vmem>>, %arg3: memref<8x1x16xf32, #tpu.memory_space<vmem>>, %arg4: memref<32x32xf32, #tpu.memory_space<vmem>>, %arg5: memref<8x32x32xf32, #tpu.memory_space<vmem>>, %arg6: memref<4x32x32xf32, #tpu.memory_space<vmem>>, %arg7: memref<8x32x32xf32, #tpu.memory_space<vmem>>, %arg8: memref<8x1x32xf32, #tpu.memory_space<vmem>>, %arg9: memref<32x32xf32, #tpu.memory_space<vmem>>, %arg10: memref<32x32xf32, #tpu.memory_space<vmem>>, %arg11: memref<8x8x32xf32, #tpu.memory_space<vmem>>, %arg12: memref<2x8x32xf32, #tpu.memory_space<vmem>>, %arg13: memref<2x8x32xf32, #tpu.memory_space<vmem>>, %arg14: memref<8x32xf32, #tpu.memory_space<vmem>>) attributes {dimension_semantics = [#tpu.dimension_semantics<parallel>], iteration_bounds = array<i64: 1>, scalar_prefetch = 0 : i64, scratch_operands = 3 : i64, tpu.core_type = #tpu.core_type<tc>, window_params = [{transform_indices = @transform_0, window_bounds = array<i64: 8, 8, 32>}, {transform_indices = @transform_1, window_bounds = array<i64: 8, 16, 32>}, {transform_indices = @transform_2, window_bounds = array<i64: 8, 1, 16>}, {pipeline_mode = #tpu.pipeline_mode<synchronous>, transform_indices = @transform_3, window_bounds = array<i64: 32, 32>}, {pipeline_mode = #tpu.pipeline_mode<synchronous>, transform_indices = @transform_4, window_bounds = array<i64: 8, 32, 32>}, {pipeline_mode = #tpu.pipeline_mode<synchronous>, transform_indices = @transform_5, window_bounds = array<i64: 4, 32, 32>}, {pipeline_mode = #tpu.pipeline_mode<synchronous>, transform_indices = @transform_6, window_bounds = array<i64: 8, 32, 32>}, {pipeline_mode = #tpu.pipeline_mode<synchronous>, transform_indices = @transform_7, window_bounds = array<i64: 8, 1, 32>}, {pipeline_mode = #tpu.pipeline_mode<synchronous>, transform_indices = @transform_8, window_bounds = array<i64: 32, 32>}, {pipeline_mode = #tpu.pipeline_mode<synchronous>, transform_indices = @transform_9, window_bounds = array<i64: 32, 32>}, {transform_indices = @transform_10, window_bounds = array<i64: 8, 8, 32>}]} {
    %c0 = arith.constant 0 : index
    %c0_0 = arith.constant 0 : index
    %c0_1 = arith.constant 0 : index
    %0 = vector.load %arg2[%c0, %c0_0, %c0_1] : memref<8x16x32xf32, #tpu.memory_space<vmem>>, vector<8x16x32xf32>
    %c0_2 = arith.constant 0 : index
    %c0_3 = arith.constant 0 : index
    %c0_4 = arith.constant 0 : index
    %1 = vector.load %arg3[%c0_2, %c0_3, %c0_4] : memref<8x1x16xf32, #tpu.memory_space<vmem>>, vector<8x1x16xf32>
    %cst = arith.constant 0.000000e+00 : f32
    %2 = vector.broadcast %cst : f32 to vector<2x8x32xf32>
    %c0_5 = arith.constant 0 : index
    %c0_6 = arith.constant 0 : index
    %c0_7 = arith.constant 0 : index
    %3 = vector.load %arg12[%c0_5, %c0_6, %c0_7] : memref<2x8x32xf32, #tpu.memory_space<vmem>>, vector<2x8x32xf32>
    tpu.vector_store %arg12[%c0_5, %c0_6, %c0_7], %2 {strides = array<i32>} : memref<2x8x32xf32, #tpu.memory_space<vmem>>, vector<2x8x32xf32>,
    %cst_8 = arith.constant 0.000000e+00 : f32
    %4 = vector.broadcast %cst_8 : f32 to vector<2x8x32xf32>
    %c0_9 = arith.constant 0 : index
    %c0_10 = arith.constant 0 : index
    %c0_11 = arith.constant 0 : index
    %5 = vector.load %arg13[%c0_9, %c0_10, %c0_11] : memref<2x8x32xf32, #tpu.memory_space<vmem>>, vector<2x8x32xf32>
    tpu.vector_store %arg13[%c0_9, %c0_10, %c0_11], %4 {strides = array<i32>} : memref<2x8x32xf32, #tpu.memory_space<vmem>>, vector<2x8x32xf32>,
    %cst_12 = arith.constant 0.000000e+00 : f32
    %6 = vector.broadcast %cst_12 : f32 to vector<8x32xf32>
    %c0_13 = arith.constant 0 : index
    %c0_14 = arith.constant 0 : index
    %7 = vector.load %arg14[%c0_13, %c0_14] : memref<8x32xf32, #tpu.memory_space<vmem>>, vector<8x32xf32>
    tpu.vector_store %arg14[%c0_13, %c0_14], %6 {strides = array<i32>} : memref<8x32xf32, #tpu.memory_space<vmem>>, vector<8x32xf32>,
    %c0_i32 = arith.constant 0 : i32
    %c8_i32 = arith.constant 8 : i32
    %8 = arith.addi %c0_i32, %c8_i32 : i32
    %c1_i32 = arith.constant 1 : i32
    scf.for %arg15 = %c0_i32 to %8 step %c1_i32  : i32 {
      %c1_i32_16 = arith.constant 1 : i32
      %9 = arith.muli %arg15, %c1_i32_16 : i32
      %c0_i32_17 = arith.constant 0 : i32
      %10 = arith.addi %c0_i32_17, %9 : i32
      %11 = arith.index_cast %10 : i32 to index
      %c0_18 = arith.constant 0 : index
      %c0_19 = arith.constant 0 : index
      %12 = vector.load %arg1[%11, %c0_18, %c0_19] : memref<8x8x32xf32, #tpu.memory_space<vmem>>, vector<1x8x32xf32>
      %13 = vector.shape_cast %12 : vector<1x8x32xf32> to vector<8x32xf32>
      %c0_20 = arith.constant 0 : index
      %c0_21 = arith.constant 0 : index
      %14 = vector.load %arg14[%c0_20, %c0_21] : memref<8x32xf32, #tpu.memory_space<vmem>>, vector<8x32xf32>
      %c0_22 = arith.constant 0 : index
      %c0_23 = arith.constant 0 : index
      %c0_24 = arith.constant 0 : index
      %15 = vector.load %arg12[%c0_22, %c0_23, %c0_24] : memref<2x8x32xf32, #tpu.memory_space<vmem>>, vector<1x8x32xf32>
      %16 = vector.shape_cast %15 : vector<1x8x32xf32> to vector<8x32xf32>
      %c0_25 = arith.constant 0 : index
      %c0_26 = arith.constant 0 : index
      %c0_27 = arith.constant 0 : index
      %17 = vector.load %arg13[%c0_25, %c0_26, %c0_27] : memref<2x8x32xf32, #tpu.memory_space<vmem>>, vector<1x8x32xf32>
      %18 = vector.shape_cast %17 : vector<1x8x32xf32> to vector<8x32xf32>
      %c0_28 = arith.constant 0 : index
      %c0_29 = arith.constant 0 : index
      %c0_30 = arith.constant 0 : index
      %19 = vector.load %arg5[%c0_28, %c0_29, %c0_30] : memref<8x32x32xf32, #tpu.memory_space<vmem>>, vector<1x32x32xf32>
      %20 = vector.shape_cast %19 : vector<1x32x32xf32> to vector<32x32xf32>
      %cst_31 = arith.constant dense<0.000000e+00> : vector<8x32xf32>
      %21 = tpu.matmul %13, %20, %cst_31 {dimension_numbers = #tpu.dot_dimension_numbers<[1], [0], [0], [1], [0, 0, 1, 1], [], []>} : vector<8x32xf32>, vector<32x32xf32>, vector<8x32xf32> -> vector<8x32xf32>
      %c0_32 = arith.constant 0 : index
      %c0_33 = arith.constant 0 : index
      %c0_34 = arith.constant 0 : index
      %22 = vector.load %arg6[%c0_32, %c0_33, %c0_34] : memref<4x32x32xf32, #tpu.memory_space<vmem>>, vector<1x32x32xf32>
      %23 = vector.shape_cast %22 : vector<1x32x32xf32> to vector<32x32xf32>
      %cst_35 = arith.constant dense<0.000000e+00> : vector<8x32xf32>
      %24 = tpu.matmul %14, %23, %cst_35 {dimension_numbers = #tpu.dot_dimension_numbers<[1], [0], [0], [1], [0, 0, 1, 1], [], []>} : vector<8x32xf32>, vector<32x32xf32>, vector<8x32xf32> -> vector<8x32xf32>
      %25 = arith.addf %21, %24 : vector<8x32xf32>
      %c0_36 = arith.constant 0 : index
      %c0_37 = arith.constant 0 : index
      %c0_38 = arith.constant 0 : index
      %26 = vector.load %arg7[%c0_36, %c0_37, %c0_38] : memref<8x32x32xf32, #tpu.memory_space<vmem>>, vector<1x32x32xf32>
      %27 = vector.shape_cast %26 : vector<1x32x32xf32> to vector<32x32xf32>
      %cst_39 = arith.constant dense<0.000000e+00> : vector<8x32xf32>
      %28 = tpu.matmul %16, %27, %cst_39 {dimension_numbers = #tpu.dot_dimension_numbers<[1], [0], [0], [1], [0, 0, 1, 1], [], []>} : vector<8x32xf32>, vector<32x32xf32>, vector<8x32xf32> -> vector<8x32xf32>
      %29 = arith.addf %25, %28 : vector<8x32xf32>
      %c0_40 = arith.constant 0 : index
      %c0_41 = arith.constant 0 : index
      %c0_42 = arith.constant 0 : index
      %30 = vector.load %arg8[%c0_40, %c0_41, %c0_42] : memref<8x1x32xf32, #tpu.memory_space<vmem>>, vector<1x1x32xf32>
      %31 = vector.shape_cast %30 : vector<1x1x32xf32> to vector<1x32xf32>
      %32 = vector.broadcast %31 : vector<1x32xf32> to vector<8x32xf32>
      %33 = arith.addf %29, %32 : vector<8x32xf32>
      %c1 = arith.constant 1 : index
      %c0_43 = arith.constant 0 : index
      %c0_44 = arith.constant 0 : index
      %34 = vector.load %arg5[%c1, %c0_43, %c0_44] : memref<8x32x32xf32, #tpu.memory_space<vmem>>, vector<1x32x32xf32>
      %35 = vector.shape_cast %34 : vector<1x32x32xf32> to vector<32x32xf32>
      %cst_45 = arith.constant dense<0.000000e+00> : vector<8x32xf32>
      %36 = tpu.matmul %13, %35, %cst_45 {dimension_numbers = #tpu.dot_dimension_numbers<[1], [0], [0], [1], [0, 0, 1, 1], [], []>} : vector<8x32xf32>, vector<32x32xf32>, vector<8x32xf32> -> vector<8x32xf32>
      %c1_46 = arith.constant 1 : index
      %c0_47 = arith.constant 0 : index
      %c0_48 = arith.constant 0 : index
      %37 = vector.load %arg6[%c1_46, %c0_47, %c0_48] : memref<4x32x32xf32, #tpu.memory_space<vmem>>, vector<1x32x32xf32>
      %38 = vector.shape_cast %37 : vector<1x32x32xf32> to vector<32x32xf32>
      %cst_49 = arith.constant dense<0.000000e+00> : vector<8x32xf32>
      %39 = tpu.matmul %14, %38, %cst_49 {dimension_numbers = #tpu.dot_dimension_numbers<[1], [0], [0], [1], [0, 0, 1, 1], [], []>} : vector<8x32xf32>, vector<32x32xf32>, vector<8x32xf32> -> vector<8x32xf32>
      %40 = arith.addf %36, %39 : vector<8x32xf32>
      %c1_50 = arith.constant 1 : index
      %c0_51 = arith.constant 0 : index
      %c0_52 = arith.constant 0 : index
      %41 = vector.load %arg7[%c1_50, %c0_51, %c0_52] : memref<8x32x32xf32, #tpu.memory_space<vmem>>, vector<1x32x32xf32>
      %42 = vector.shape_cast %41 : vector<1x32x32xf32> to vector<32x32xf32>
      %cst_53 = arith.constant dense<0.000000e+00> : vector<8x32xf32>
      %43 = tpu.matmul %16, %42, %cst_53 {dimension_numbers = #tpu.dot_dimension_numbers<[1], [0], [0], [1], [0, 0, 1, 1], [], []>} : vector<8x32xf32>, vector<32x32xf32>, vector<8x32xf32> -> vector<8x32xf32>
      %44 = arith.addf %40, %43 : vector<8x32xf32>
      %c1_54 = arith.constant 1 : index
      %c0_55 = arith.constant 0 : index
      %c0_56 = arith.constant 0 : index
      %45 = vector.load %arg8[%c1_54, %c0_55, %c0_56] : memref<8x1x32xf32, #tpu.memory_space<vmem>>, vector<1x1x32xf32>
      %46 = vector.shape_cast %45 : vector<1x1x32xf32> to vector<1x32xf32>
      %47 = vector.broadcast %46 : vector<1x32xf32> to vector<8x32xf32>
      %48 = arith.addf %44, %47 : vector<8x32xf32>
      %c2 = arith.constant 2 : index
      %c0_57 = arith.constant 0 : index
      %c0_58 = arith.constant 0 : index
      %49 = vector.load %arg5[%c2, %c0_57, %c0_58] : memref<8x32x32xf32, #tpu.memory_space<vmem>>, vector<1x32x32xf32>
      %50 = vector.shape_cast %49 : vector<1x32x32xf32> to vector<32x32xf32>
      %cst_59 = arith.constant dense<0.000000e+00> : vector<8x32xf32>
      %51 = tpu.matmul %13, %50, %cst_59 {dimension_numbers = #tpu.dot_dimension_numbers<[1], [0], [0], [1], [0, 0, 1, 1], [], []>} : vector<8x32xf32>, vector<32x32xf32>, vector<8x32xf32> -> vector<8x32xf32>
      %c2_60 = arith.constant 2 : index
      %c0_61 = arith.constant 0 : index
      %c0_62 = arith.constant 0 : index
      %52 = vector.load %arg6[%c2_60, %c0_61, %c0_62] : memref<4x32x32xf32, #tpu.memory_space<vmem>>, vector<1x32x32xf32>
      %53 = vector.shape_cast %52 : vector<1x32x32xf32> to vector<32x32xf32>
      %cst_63 = arith.constant dense<0.000000e+00> : vector<8x32xf32>
      %54 = tpu.matmul %14, %53, %cst_63 {dimension_numbers = #tpu.dot_dimension_numbers<[1], [0], [0], [1], [0, 0, 1, 1], [], []>} : vector<8x32xf32>, vector<32x32xf32>, vector<8x32xf32> -> vector<8x32xf32>
      %55 = arith.addf %51, %54 : vector<8x32xf32>
      %c2_64 = arith.constant 2 : index
      %c0_65 = arith.constant 0 : index
      %c0_66 = arith.constant 0 : index
      %56 = vector.load %arg7[%c2_64, %c0_65, %c0_66] : memref<8x32x32xf32, #tpu.memory_space<vmem>>, vector<1x32x32xf32>
      %57 = vector.shape_cast %56 : vector<1x32x32xf32> to vector<32x32xf32>
      %cst_67 = arith.constant dense<0.000000e+00> : vector<8x32xf32>
      %58 = tpu.matmul %16, %57, %cst_67 {dimension_numbers = #tpu.dot_dimension_numbers<[1], [0], [0], [1], [0, 0, 1, 1], [], []>} : vector<8x32xf32>, vector<32x32xf32>, vector<8x32xf32> -> vector<8x32xf32>
      %59 = arith.addf %55, %58 : vector<8x32xf32>
      %c2_68 = arith.constant 2 : index
      %c0_69 = arith.constant 0 : index
      %c0_70 = arith.constant 0 : index
      %60 = vector.load %arg8[%c2_68, %c0_69, %c0_70] : memref<8x1x32xf32, #tpu.memory_space<vmem>>, vector<1x1x32xf32>
      %61 = vector.shape_cast %60 : vector<1x1x32xf32> to vector<1x32xf32>
      %62 = vector.broadcast %61 : vector<1x32xf32> to vector<8x32xf32>
      %63 = arith.addf %59, %62 : vector<8x32xf32>
      %c3 = arith.constant 3 : index
      %c0_71 = arith.constant 0 : index
      %c0_72 = arith.constant 0 : index
      %64 = vector.load %arg5[%c3, %c0_71, %c0_72] : memref<8x32x32xf32, #tpu.memory_space<vmem>>, vector<1x32x32xf32>
      %65 = vector.shape_cast %64 : vector<1x32x32xf32> to vector<32x32xf32>
      %cst_73 = arith.constant dense<0.000000e+00> : vector<8x32xf32>
      %66 = tpu.matmul %13, %65, %cst_73 {dimension_numbers = #tpu.dot_dimension_numbers<[1], [0], [0], [1], [0, 0, 1, 1], [], []>} : vector<8x32xf32>, vector<32x32xf32>, vector<8x32xf32> -> vector<8x32xf32>
      %c3_74 = arith.constant 3 : index
      %c0_75 = arith.constant 0 : index
      %c0_76 = arith.constant 0 : index
      %67 = vector.load %arg6[%c3_74, %c0_75, %c0_76] : memref<4x32x32xf32, #tpu.memory_space<vmem>>, vector<1x32x32xf32>
      %68 = vector.shape_cast %67 : vector<1x32x32xf32> to vector<32x32xf32>
      %cst_77 = arith.constant dense<0.000000e+00> : vector<8x32xf32>
      %69 = tpu.matmul %14, %68, %cst_77 {dimension_numbers = #tpu.dot_dimension_numbers<[1], [0], [0], [1], [0, 0, 1, 1], [], []>} : vector<8x32xf32>, vector<32x32xf32>, vector<8x32xf32> -> vector<8x32xf32>
      %70 = arith.addf %66, %69 : vector<8x32xf32>
      %c3_78 = arith.constant 3 : index
      %c0_79 = arith.constant 0 : index
      %c0_80 = arith.constant 0 : index
      %71 = vector.load %arg7[%c3_78, %c0_79, %c0_80] : memref<8x32x32xf32, #tpu.memory_space<vmem>>, vector<1x32x32xf32>
      %72 = vector.shape_cast %71 : vector<1x32x32xf32> to vector<32x32xf32>
      %cst_81 = arith.constant dense<0.000000e+00> : vector<8x32xf32>
      %73 = tpu.matmul %16, %72, %cst_81 {dimension_numbers = #tpu.dot_dimension_numbers<[1], [0], [0], [1], [0, 0, 1, 1], [], []>} : vector<8x32xf32>, vector<32x32xf32>, vector<8x32xf32> -> vector<8x32xf32>
      %74 = arith.addf %70, %73 : vector<8x32xf32>
      %c3_82 = arith.constant 3 : index
      %c0_83 = arith.constant 0 : index
      %c0_84 = arith.constant 0 : index
      %75 = vector.load %arg8[%c3_82, %c0_83, %c0_84] : memref<8x1x32xf32, #tpu.memory_space<vmem>>, vector<1x1x32xf32>
      %76 = vector.shape_cast %75 : vector<1x1x32xf32> to vector<1x32xf32>
      %77 = vector.broadcast %76 : vector<1x32xf32> to vector<8x32xf32>
      %78 = arith.addf %74, %77 : vector<8x32xf32>
      %79 = arith.negf %33 : vector<8x32xf32>
      %80 = math.exp %79 : vector<8x32xf32>
      %cst_85 = arith.constant 1.000000e+00 : f32
      %81 = vector.broadcast %cst_85 : f32 to vector<8x32xf32>
      %82 = arith.addf %81, %80 : vector<8x32xf32>
      %83 = arith.divf %81, %82 : vector<8x32xf32>
      %84 = arith.negf %48 : vector<8x32xf32>
      %85 = math.exp %84 : vector<8x32xf32>
      %cst_86 = arith.constant 1.000000e+00 : f32
      %86 = vector.broadcast %cst_86 : f32 to vector<8x32xf32>
      %87 = arith.addf %86, %85 : vector<8x32xf32>
      %88 = arith.divf %86, %87 : vector<8x32xf32>
      %89 = math.tanh %63 : vector<8x32xf32>
      %90 = arith.negf %78 : vector<8x32xf32>
      %91 = math.exp %90 : vector<8x32xf32>
      %cst_87 = arith.constant 1.000000e+00 : f32
      %92 = vector.broadcast %cst_87 : f32 to vector<8x32xf32>
      %93 = arith.addf %92, %91 : vector<8x32xf32>
      %94 = arith.divf %92, %93 : vector<8x32xf32>
      %95 = arith.mulf %88, %18 : vector<8x32xf32>
      %96 = arith.mulf %83, %89 : vector<8x32xf32>
      %97 = arith.addf %95, %96 : vector<8x32xf32>
      %98 = math.tanh %97 : vector<8x32xf32>
      %99 = arith.mulf %94, %98 : vector<8x32xf32>
      %c0_88 = arith.constant 0 : index
      %c0_89 = arith.constant 0 : index
      %c0_90 = arith.constant 0 : index
      %100 = vector.load %arg12[%c0_88, %c0_89, %c0_90] : memref<2x8x32xf32, #tpu.memory_space<vmem>>, vector<1x8x32xf32>
      %101 = vector.shape_cast %100 : vector<1x8x32xf32> to vector<8x32xf32>
      %102 = vector.shape_cast %99 : vector<8x32xf32> to vector<1x8x32xf32>
      tpu.vector_store %arg12[%c0_88, %c0_89, %c0_90], %102 {strides = array<i32>} : memref<2x8x32xf32, #tpu.memory_space<vmem>>, vector<1x8x32xf32>,
      %c0_91 = arith.constant 0 : index
      %c0_92 = arith.constant 0 : index
      %c0_93 = arith.constant 0 : index
      %103 = vector.load %arg13[%c0_91, %c0_92, %c0_93] : memref<2x8x32xf32, #tpu.memory_space<vmem>>, vector<1x8x32xf32>
      %104 = vector.shape_cast %103 : vector<1x8x32xf32> to vector<8x32xf32>
      %105 = vector.shape_cast %97 : vector<8x32xf32> to vector<1x8x32xf32>
      tpu.vector_store %arg13[%c0_91, %c0_92, %c0_93], %105 {strides = array<i32>} : memref<2x8x32xf32, #tpu.memory_space<vmem>>, vector<1x8x32xf32>,
      %c1_94 = arith.constant 1 : index
      %c0_95 = arith.constant 0 : index
      %c0_96 = arith.constant 0 : index
      %106 = vector.load %arg12[%c1_94, %c0_95, %c0_96] : memref<2x8x32xf32, #tpu.memory_space<vmem>>, vector<1x8x32xf32>
      %107 = vector.shape_cast %106 : vector<1x8x32xf32> to vector<8x32xf32>
      %c1_97 = arith.constant 1 : index
      %c0_98 = arith.constant 0 : index
      %c0_99 = arith.constant 0 : index
      %108 = vector.load %arg13[%c1_97, %c0_98, %c0_99] : memref<2x8x32xf32, #tpu.memory_space<vmem>>, vector<1x8x32xf32>
      %109 = vector.shape_cast %108 : vector<1x8x32xf32> to vector<8x32xf32>
      %c4 = arith.constant 4 : index
      %c0_100 = arith.constant 0 : index
      %c0_101 = arith.constant 0 : index
      %110 = vector.load %arg5[%c4, %c0_100, %c0_101] : memref<8x32x32xf32, #tpu.memory_space<vmem>>, vector<1x32x32xf32>
      %111 = vector.shape_cast %110 : vector<1x32x32xf32> to vector<32x32xf32>
      %cst_102 = arith.constant dense<0.000000e+00> : vector<8x32xf32>
      %112 = tpu.matmul %99, %111, %cst_102 {dimension_numbers = #tpu.dot_dimension_numbers<[1], [0], [0], [1], [0, 0, 1, 1], [], []>} : vector<8x32xf32>, vector<32x32xf32>, vector<8x32xf32> -> vector<8x32xf32>
      %c4_103 = arith.constant 4 : index
      %c0_104 = arith.constant 0 : index
      %c0_105 = arith.constant 0 : index
      %113 = vector.load %arg7[%c4_103, %c0_104, %c0_105] : memref<8x32x32xf32, #tpu.memory_space<vmem>>, vector<1x32x32xf32>
      %114 = vector.shape_cast %113 : vector<1x32x32xf32> to vector<32x32xf32>
      %cst_106 = arith.constant dense<0.000000e+00> : vector<8x32xf32>
      %115 = tpu.matmul %107, %114, %cst_106 {dimension_numbers = #tpu.dot_dimension_numbers<[1], [0], [0], [1], [0, 0, 1, 1], [], []>} : vector<8x32xf32>, vector<32x32xf32>, vector<8x32xf32> -> vector<8x32xf32>
      %116 = arith.addf %112, %115 : vector<8x32xf32>
      %c4_107 = arith.constant 4 : index
      %c0_108 = arith.constant 0 : index
      %c0_109 = arith.constant 0 : index
      %117 = vector.load %arg8[%c4_107, %c0_108, %c0_109] : memref<8x1x32xf32, #tpu.memory_space<vmem>>, vector<1x1x32xf32>
      %118 = vector.shape_cast %117 : vector<1x1x32xf32> to vector<1x32xf32>
      %119 = vector.broadcast %118 : vector<1x32xf32> to vector<8x32xf32>
      %120 = arith.addf %116, %119 : vector<8x32xf32>
      %c5 = arith.constant 5 : index
      %c0_110 = arith.constant 0 : index
      %c0_111 = arith.constant 0 : index
      %121 = vector.load %arg5[%c5, %c0_110, %c0_111] : memref<8x32x32xf32, #tpu.memory_space<vmem>>, vector<1x32x32xf32>
      %122 = vector.shape_cast %121 : vector<1x32x32xf32> to vector<32x32xf32>
      %cst_112 = arith.constant dense<0.000000e+00> : vector<8x32xf32>
      %123 = tpu.matmul %99, %122, %cst_112 {dimension_numbers = #tpu.dot_dimension_numbers<[1], [0], [0], [1], [0, 0, 1, 1], [], []>} : vector<8x32xf32>, vector<32x32xf32>, vector<8x32xf32> -> vector<8x32xf32>
      %c5_113 = arith.constant 5 : index
      %c0_114 = arith.constant 0 : index
      %c0_115 = arith.constant 0 : index
      %124 = vector.load %arg7[%c5_113, %c0_114, %c0_115] : memref<8x32x32xf32, #tpu.memory_space<vmem>>, vector<1x32x32xf32>
      %125 = vector.shape_cast %124 : vector<1x32x32xf32> to vector<32x32xf32>
      %cst_116 = arith.constant dense<0.000000e+00> : vector<8x32xf32>
      %126 = tpu.matmul %107, %125, %cst_116 {dimension_numbers = #tpu.dot_dimension_numbers<[1], [0], [0], [1], [0, 0, 1, 1], [], []>} : vector<8x32xf32>, vector<32x32xf32>, vector<8x32xf32> -> vector<8x32xf32>
      %127 = arith.addf %123, %126 : vector<8x32xf32>
      %c5_117 = arith.constant 5 : index
      %c0_118 = arith.constant 0 : index
      %c0_119 = arith.constant 0 : index
      %128 = vector.load %arg8[%c5_117, %c0_118, %c0_119] : memref<8x1x32xf32, #tpu.memory_space<vmem>>, vector<1x1x32xf32>
      %129 = vector.shape_cast %128 : vector<1x1x32xf32> to vector<1x32xf32>
      %130 = vector.broadcast %129 : vector<1x32xf32> to vector<8x32xf32>
      %131 = arith.addf %127, %130 : vector<8x32xf32>
      %c6 = arith.constant 6 : index
      %c0_120 = arith.constant 0 : index
      %c0_121 = arith.constant 0 : index
      %132 = vector.load %arg5[%c6, %c0_120, %c0_121] : memref<8x32x32xf32, #tpu.memory_space<vmem>>, vector<1x32x32xf32>
      %133 = vector.shape_cast %132 : vector<1x32x32xf32> to vector<32x32xf32>
      %cst_122 = arith.constant dense<0.000000e+00> : vector<8x32xf32>
      %134 = tpu.matmul %99, %133, %cst_122 {dimension_numbers = #tpu.dot_dimension_numbers<[1], [0], [0], [1], [0, 0, 1, 1], [], []>} : vector<8x32xf32>, vector<32x32xf32>, vector<8x32xf32> -> vector<8x32xf32>
      %c6_123 = arith.constant 6 : index
      %c0_124 = arith.constant 0 : index
      %c0_125 = arith.constant 0 : index
      %135 = vector.load %arg7[%c6_123, %c0_124, %c0_125] : memref<8x32x32xf32, #tpu.memory_space<vmem>>, vector<1x32x32xf32>
      %136 = vector.shape_cast %135 : vector<1x32x32xf32> to vector<32x32xf32>
      %cst_126 = arith.constant dense<0.000000e+00> : vector<8x32xf32>
      %137 = tpu.matmul %107, %136, %cst_126 {dimension_numbers = #tpu.dot_dimension_numbers<[1], [0], [0], [1], [0, 0, 1, 1], [], []>} : vector<8x32xf32>, vector<32x32xf32>, vector<8x32xf32> -> vector<8x32xf32>
      %138 = arith.addf %134, %137 : vector<8x32xf32>
      %c6_127 = arith.constant 6 : index
      %c0_128 = arith.constant 0 : index
      %c0_129 = arith.constant 0 : index
      %139 = vector.load %arg8[%c6_127, %c0_128, %c0_129] : memref<8x1x32xf32, #tpu.memory_space<vmem>>, vector<1x1x32xf32>
      %140 = vector.shape_cast %139 : vector<1x1x32xf32> to vector<1x32xf32>
      %141 = vector.broadcast %140 : vector<1x32xf32> to vector<8x32xf32>
      %142 = arith.addf %138, %141 : vector<8x32xf32>
      %c7 = arith.constant 7 : index
      %c0_130 = arith.constant 0 : index
      %c0_131 = arith.constant 0 : index
      %143 = vector.load %arg5[%c7, %c0_130, %c0_131] : memref<8x32x32xf32, #tpu.memory_space<vmem>>, vector<1x32x32xf32>
      %144 = vector.shape_cast %143 : vector<1x32x32xf32> to vector<32x32xf32>
      %cst_132 = arith.constant dense<0.000000e+00> : vector<8x32xf32>
      %145 = tpu.matmul %99, %144, %cst_132 {dimension_numbers = #tpu.dot_dimension_numbers<[1], [0], [0], [1], [0, 0, 1, 1], [], []>} : vector<8x32xf32>, vector<32x32xf32>, vector<8x32xf32> -> vector<8x32xf32>
      %c7_133 = arith.constant 7 : index
      %c0_134 = arith.constant 0 : index
      %c0_135 = arith.constant 0 : index
      %146 = vector.load %arg7[%c7_133, %c0_134, %c0_135] : memref<8x32x32xf32, #tpu.memory_space<vmem>>, vector<1x32x32xf32>
      %147 = vector.shape_cast %146 : vector<1x32x32xf32> to vector<32x32xf32>
      %cst_136 = arith.constant dense<0.000000e+00> : vector<8x32xf32>
      %148 = tpu.matmul %107, %147, %cst_136 {dimension_numbers = #tpu.dot_dimension_numbers<[1], [0], [0], [1], [0, 0, 1, 1], [], []>} : vector<8x32xf32>, vector<32x32xf32>, vector<8x32xf32> -> vector<8x32xf32>
      %149 = arith.addf %145, %148 : vector<8x32xf32>
      %c7_137 = arith.constant 7 : index
      %c0_138 = arith.constant 0 : index
      %c0_139 = arith.constant 0 : index
      %150 = vector.load %arg8[%c7_137, %c0_138, %c0_139] : memref<8x1x32xf32, #tpu.memory_space<vmem>>, vector<1x1x32xf32>
      %151 = vector.shape_cast %150 : vector<1x1x32xf32> to vector<1x32xf32>
      %152 = vector.broadcast %151 : vector<1x32xf32> to vector<8x32xf32>
      %153 = arith.addf %149, %152 : vector<8x32xf32>
      %154 = arith.negf %120 : vector<8x32xf32>
      %155 = math.exp %154 : vector<8x32xf32>
      %cst_140 = arith.constant 1.000000e+00 : f32
      %156 = vector.broadcast %cst_140 : f32 to vector<8x32xf32>
      %157 = arith.addf %156, %155 : vector<8x32xf32>
      %158 = arith.divf %156, %157 : vector<8x32xf32>
      %159 = arith.negf %131 : vector<8x32xf32>
      %160 = math.exp %159 : vector<8x32xf32>
      %cst_141 = arith.constant 1.000000e+00 : f32
      %161 = vector.broadcast %cst_141 : f32 to vector<8x32xf32>
      %162 = arith.addf %161, %160 : vector<8x32xf32>
      %163 = arith.divf %161, %162 : vector<8x32xf32>
      %164 = math.tanh %142 : vector<8x32xf32>
      %165 = arith.negf %153 : vector<8x32xf32>
      %166 = math.exp %165 : vector<8x32xf32>
      %cst_142 = arith.constant 1.000000e+00 : f32
      %167 = vector.broadcast %cst_142 : f32 to vector<8x32xf32>
      %168 = arith.addf %167, %166 : vector<8x32xf32>
      %169 = arith.divf %167, %168 : vector<8x32xf32>
      %170 = arith.mulf %163, %109 : vector<8x32xf32>
      %171 = arith.mulf %158, %164 : vector<8x32xf32>
      %172 = arith.addf %170, %171 : vector<8x32xf32>
      %173 = math.tanh %172 : vector<8x32xf32>
      %174 = arith.mulf %169, %173 : vector<8x32xf32>
      %c1_143 = arith.constant 1 : index
      %c0_144 = arith.constant 0 : index
      %c0_145 = arith.constant 0 : index
      %175 = vector.load %arg12[%c1_143, %c0_144, %c0_145] : memref<2x8x32xf32, #tpu.memory_space<vmem>>, vector<1x8x32xf32>
      %176 = vector.shape_cast %175 : vector<1x8x32xf32> to vector<8x32xf32>
      %177 = vector.shape_cast %174 : vector<8x32xf32> to vector<1x8x32xf32>
      tpu.vector_store %arg12[%c1_143, %c0_144, %c0_145], %177 {strides = array<i32>} : memref<2x8x32xf32, #tpu.memory_space<vmem>>, vector<1x8x32xf32>,
      %c1_146 = arith.constant 1 : index
      %c0_147 = arith.constant 0 : index
      %c0_148 = arith.constant 0 : index
      %178 = vector.load %arg13[%c1_146, %c0_147, %c0_148] : memref<2x8x32xf32, #tpu.memory_space<vmem>>, vector<1x8x32xf32>
      %179 = vector.shape_cast %178 : vector<1x8x32xf32> to vector<8x32xf32>
      %180 = vector.shape_cast %172 : vector<8x32xf32> to vector<1x8x32xf32>
      tpu.vector_store %arg13[%c1_146, %c0_147, %c0_148], %180 {strides = array<i32>} : memref<2x8x32xf32, #tpu.memory_space<vmem>>, vector<1x8x32xf32>,
      %c0_149 = arith.constant 0 : index
      %c0_150 = arith.constant 0 : index
      %181 = vector.load %arg4[%c0_149, %c0_150] : memref<32x32xf32, #tpu.memory_space<vmem>>, vector<32x32xf32>
      %cst_151 = arith.constant dense<0.000000e+00> : vector<8x32xf32>
      %182 = tpu.matmul %174, %181, %cst_151 {dimension_numbers = #tpu.dot_dimension_numbers<[1], [0], [0], [1], [0, 0, 1, 1], [], []>} : vector<8x32xf32>, vector<32x32xf32>, vector<8x32xf32> -> vector<8x32xf32>
      %183 = vector.shape_cast %182 : vector<8x32xf32> to vector<8x1x32xf32>
      "tpu.trace_start"() <{level = 10 : i32, message = "bqe,bse->bqs"}> : () -> ()
      %cst_152 = arith.constant dense<0.000000e+00> : vector<8x1x16xf32>
      %184 = tpu.matmul %183, %0, %cst_152 {dimension_numbers = #tpu.dot_dimension_numbers<[2], [2], [1], [1], [0, 0, 0, 1, 1, 1], [0], [0]>} : vector<8x1x32xf32>, vector<8x16x32xf32>, vector<8x1x16xf32> -> vector<8x1x16xf32>
      "tpu.trace_stop"() : () -> ()
      %185 = arith.addf %184, %1 : vector<8x1x16xf32>
      %cst_153 = arith.constant dense<0xFF800000> : vector<8x1xf32>
      %186 = vector.multi_reduction <maximumf>, %185, %cst_153 [2] : vector<8x1x16xf32> to vector<8x1xf32>
      %187 = vector.shape_cast %186 : vector<8x1xf32> to vector<8x1x1xf32>
      %188 = vector.broadcast %187 : vector<8x1x1xf32> to vector<8x1x16xf32>
      %189 = arith.subf %185, %188 : vector<8x1x16xf32>
      %190 = math.exp %189 : vector<8x1x16xf32>
      %cst_154 = arith.constant dense<0.000000e+00> : vector<8x1xf32>
      %191 = vector.multi_reduction <add>, %190, %cst_154 [2] : vector<8x1x16xf32> to vector<8x1xf32>
      %192 = vector.shape_cast %191 : vector<8x1xf32> to vector<8x1x1xf32>
      %193 = tpu.reciprocal %192 {approx = true} : vector<8x1x1xf32> -> vector<8x1x1xf32>
      %194 = vector.broadcast %193 : vector<8x1x1xf32> to vector<8x1x16xf32>
      %195 = arith.mulf %190, %194 : vector<8x1x16xf32>
      "tpu.trace_start"() <{level = 10 : i32, message = "bqs,bse->bqe"}> : () -> ()
      %cst_155 = arith.constant dense<0.000000e+00> : vector<8x1x32xf32>
      %196 = tpu.matmul %195, %0, %cst_155 {dimension_numbers = #tpu.dot_dimension_numbers<[2], [1], [1], [2], [0, 0, 0, 1, 1, 2], [0], [0]>} : vector<8x1x16xf32>, vector<8x16x32xf32>, vector<8x1x32xf32> -> vector<8x1x32xf32>
      "tpu.trace_stop"() : () -> ()
      %197 = vector.shape_cast %196 : vector<8x1x32xf32> to vector<8x32xf32>
      %c0_156 = arith.constant 0 : index
      %c0_157 = arith.constant 0 : index
      %198 = vector.load %arg9[%c0_156, %c0_157] : memref<32x32xf32, #tpu.memory_space<vmem>>, vector<32x32xf32>
      %cst_158 = arith.constant dense<0.000000e+00> : vector<8x32xf32>
      %199 = tpu.matmul %174, %198, %cst_158 {dimension_numbers = #tpu.dot_dimension_numbers<[1], [0], [0], [1], [0, 0, 1, 1], [], []>} : vector<8x32xf32>, vector<32x32xf32>, vector<8x32xf32> -> vector<8x32xf32>
      %c0_159 = arith.constant 0 : index
      %c0_160 = arith.constant 0 : index
      %200 = vector.load %arg10[%c0_159, %c0_160] : memref<32x32xf32, #tpu.memory_space<vmem>>, vector<32x32xf32>
      %cst_161 = arith.constant dense<0.000000e+00> : vector<8x32xf32>
      %201 = tpu.matmul %197, %200, %cst_161 {dimension_numbers = #tpu.dot_dimension_numbers<[1], [0], [0], [1], [0, 0, 1, 1], [], []>} : vector<8x32xf32>, vector<32x32xf32>, vector<8x32xf32> -> vector<8x32xf32>
      %202 = arith.addf %199, %201 : vector<8x32xf32>
      %203 = math.tanh %202 : vector<8x32xf32>
      %c0_162 = arith.constant 0 : index
      %c0_163 = arith.constant 0 : index
      %204 = vector.load %arg14[%c0_162, %c0_163] : memref<8x32xf32, #tpu.memory_space<vmem>>, vector<8x32xf32>
      tpu.vector_store %arg14[%c0_162, %c0_163], %203 {strides = array<i32>} : memref<8x32xf32, #tpu.memory_space<vmem>>, vector<8x32xf32>,
      %205 = arith.mulf %203, %203 : vector<8x32xf32>
      %cst_164 = arith.constant dense<0.000000e+00> : vector<8xf32>
      %206 = vector.multi_reduction <add>, %205, %cst_164 [1] : vector<8x32xf32> to vector<8xf32>
      %207 = vector.shape_cast %206 : vector<8xf32> to vector<8x1xf32>
      %cst_165 = arith.constant 1.000000e-10 : f32
      %208 = vector.broadcast %cst_165 : f32 to vector<8x1xf32>
      %209 = arith.maximumf %207, %208 : vector<8x1xf32>
      %210 = math.rsqrt %209 : vector<8x1xf32>
      %cst_166 = arith.constant 5.65685415 : f32
      %211 = vector.broadcast %cst_166 : f32 to vector<8x1xf32>
      %212 = arith.mulf %211, %210 : vector<8x1xf32>
      %213 = vector.broadcast %212 : vector<8x1xf32> to vector<8x32xf32>
      %214 = arith.mulf %203, %213 : vector<8x32xf32>
      %215 = arith.index_cast %10 : i32 to index
      %c0_167 = arith.constant 0 : index
      %c0_168 = arith.constant 0 : index
      %216 = vector.load %arg11[%215, %c0_167, %c0_168] : memref<8x8x32xf32, #tpu.memory_space<vmem>>, vector<1x8x32xf32>
      %217 = vector.shape_cast %216 : vector<1x8x32xf32> to vector<8x32xf32>
      %218 = vector.shape_cast %214 : vector<8x32xf32> to vector<1x8x32xf32>
      tpu.vector_store %arg11[%215, %c0_167, %c0_168], %218 {strides = array<i32>} : memref<8x8x32xf32, #tpu.memory_space<vmem>>, vector<1x8x32xf32>,
    }
    %c8_i32_15 = arith.constant 8 : i32
    return
  }
  func.func @transform_0(%arg0: i32) -> (i32, i32, i32) {
    %c0_i32 = arith.constant 0 : i32
    %c0_i32_0 = arith.constant 0 : i32
    %c0_i32_1 = arith.constant 0 : i32
    return %c0_i32, %arg0, %c0_i32_0 : i32, i32, i32
  }
  func.func @transform_1(%arg0: i32) -> (i32, i32, i32) {
    %c0_i32 = arith.constant 0 : i32
    %c0_i32_0 = arith.constant 0 : i32
    %c0_i32_1 = arith.constant 0 : i32
    return %arg0, %c0_i32, %c0_i32_0 : i32, i32, i32
  }
  func.func @transform_2(%arg0: i32) -> (i32, i32, i32) {
    %c0_i32 = arith.constant 0 : i32
    %c0_i32_0 = arith.constant 0 : i32
    %c0_i32_1 = arith.constant 0 : i32
    return %arg0, %c0_i32, %c0_i32_0 : i32, i32, i32
  }
  func.func @transform_3(%arg0: i32) -> (i32, i32) {
    %c0_i32 = arith.constant 0 : i32
    %c0_i32_0 = arith.constant 0 : i32
    %c0_i32_1 = arith.constant 0 : i32
    return %c0_i32, %c0_i32_0 : i32, i32
  }
  func.func @transform_4(%arg0: i32) -> (i32, i32, i32) {
    %c0_i32 = arith.constant 0 : i32
    %c0_i32_0 = arith.constant 0 : i32
    %c0_i32_1 = arith.constant 0 : i32
    %c0_i32_2 = arith.constant 0 : i32
    return %c0_i32, %c0_i32_0, %c0_i32_1 : i32, i32, i32
  }
  func.func @transform_5(%arg0: i32) -> (i32, i32, i32) {
    %c0_i32 = arith.constant 0 : i32
    %c0_i32_0 = arith.constant 0 : i32
    %c0_i32_1 = arith.constant 0 : i32
    %c0_i32_2 = arith.constant 0 : i32
    return %c0_i32, %c0_i32_0, %c0_i32_1 : i32, i32, i32
  }
  func.func @transform_6(%arg0: i32) -> (i32, i32, i32) {
    %c0_i32 = arith.constant 0 : i32
    %c0_i32_0 = arith.constant 0 : i32
    %c0_i32_1 = arith.constant 0 : i32
    %c0_i32_2 = arith.constant 0 : i32
    return %c0_i32, %c0_i32_0, %c0_i32_1 : i32, i32, i32
  }
  func.func @transform_7(%arg0: i32) -> (i32, i32, i32) {
    %c0_i32 = arith.constant 0 : i32
    %c0_i32_0 = arith.constant 0 : i32
    %c0_i32_1 = arith.constant 0 : i32
    %c0_i32_2 = arith.constant 0 : i32
    return %c0_i32, %c0_i32_0, %c0_i32_1 : i32, i32, i32
  }
  func.func @transform_8(%arg0: i32) -> (i32, i32) {
    %c0_i32 = arith.constant 0 : i32
    %c0_i32_0 = arith.constant 0 : i32
    %c0_i32_1 = arith.constant 0 : i32
    return %c0_i32, %c0_i32_0 : i32, i32
  }
  func.func @transform_9(%arg0: i32) -> (i32, i32) {
    %c0_i32 = arith.constant 0 : i32
    %c0_i32_0 = arith.constant 0 : i32
    %c0_i32_1 = arith.constant 0 : i32
    return %c0_i32, %c0_i32_0 : i32, i32
  }
  func.func @transform_10(%arg0: i32) -> (i32, i32, i32) {
    %c0_i32 = arith.constant 0 : i32
    %c0_i32_0 = arith.constant 0 : i32
    %c0_i32_1 = arith.constant 0 : i32
    return %c0_i32, %arg0, %c0_i32_0 : i32, i32, i32
  }
}

</mosaic_0001>

<bundles_post_ra>
// kernel: tpu_custom_call.1
= control target key start
LH: loop header
LB: loop body
LE: loop exit
PB: predicated region body
PF: predicated region fallthrough
CT: control target
= control target key end

     0   :  { %15 = vsyncpa [#allocation6], 0  ;;  %s2416_s0 = inlined_call_operand.hbm [shape: f32[8,8,32], index: 0, kind: input, shape index: {}]   ;;  %s2417_s1 = inlined_call_operand.hbm [shape: f32[8,16,32], index: 1, kind: input, shape index: {}]   ;;  %s2418_s2 = inlined_call_operand.hbm [shape: f32[8,1,16], index: 2, kind: input, shape index: {}]   ;;  %s2419_s3 = inlined_call_operand.hbm [shape: f32[32,32], index: 3, kind: input, shape index: {}]   ;;  %s2420_s4 = inlined_call_operand.hbm [shape: f32[8,32,32], index: 4, kind: input, shape index: {}]   ;;  %s2421_s5 = inlined_call_operand.hbm [shape: f32[4,32,32], index: 5, kind: input, shape index: {}]   ;;  %s2422_s6 = inlined_call_operand.hbm [shape: f32[8,32,32], index: 6, kind: input, shape index: {}]   ;;  %s2423_s7 = inlined_call_operand.hbm [shape: f32[8,1,32], index: 7, kind: input, shape index: {}]   ;;  %s2424_s8 = inlined_call_operand.hbm [shape: f32[32,32], index: 8, kind: input, shape index: {}]   ;;  %s2425_s9 = inlined_call_operand.hbm [shape: f32[32,32], index: 9, kind: input, shape index: {}]   ;;  %s2426_s10 = inlined_call_operand.hbm [shape: f32[8,8,32], index: 10, kind: output, shape index: {}]  }
   0x1   :  { %16 = vsyncpa [#allocation9], 0 }
   0x2   :  { %17 = vsyncpa [#allocation12], 0 }
   0x3   :  { %18 = vsyncpa [#allocation15], 0 }
   0x4   :  { %19 = vsyncpa [#allocation18], 0 }
   0x5   :  { %20 = vsyncpa [#allocation21], 0 }
   0x6   :  { %21 = vsyncpa [#allocation7], 0  ;;  %s39_s15 = sshll.u32 %s2417_s1, 4  ;;  %s2045_s16 = smov [#allocation8]   ;;  %s40_s15 = int_to_ptr.hbm [resolvable:$true] %s39_s15 }
   0x7   :  { %s41_s17 = sshll.u32 %s2045_s16, 4  ;;  %s65_s20 = sshll.u32 %s2419_s3, 4  ;;  %s42_s17 = int_to_ptr.vmem [resolvable:$true] %s41_s17  ;;  %s66_s20 = int_to_ptr.hbm [resolvable:$true] %s65_s20 }
   0x8   :  { %s2046_s21 = smov 128   ;;  %s2047_s22 = smov 8  }
   0x9   :  { %47 = dma.hbm_to_vmem [thread:$0]  %s40_s15, 2048, %s42_s17, [#allocation9], %s2046_s21, %s2046_s21, %s2047_s22  }
   0xa   :  { %s2048_s23 = smov [#allocation11]   ;;  %s91_s1 = sshll.u32 %s2421_s5, 4  ;;  %s92_s1 = int_to_ptr.hbm [resolvable:$true] %s91_s1 }
   0xb   :  { %s67_s24 = sshll.u32 %s2048_s23, 4  ;;  %s2049_s3 = smov [#allocation14]   ;;  %s68_s24 = int_to_ptr.vmem [resolvable:$true] %s67_s24 }
   0xc   :  { %73 = dma.hbm_to_vmem [thread:$0]  %s66_s20, 512, %s68_s24, [#allocation12], %s2046_s21, %s2046_s21, %s2047_s22  }
   0xd   :  { %s93_s27 = sshll.u32 %s2049_s3, 4  ;;  %s117_s30 = sshll.u32 %s2423_s7, 4  ;;  %s94_s27 = int_to_ptr.vmem [resolvable:$true] %s93_s27  ;;  %s118_s30 = int_to_ptr.hbm [resolvable:$true] %s117_s30 }
   0xe   :  { %99 = dma.hbm_to_vmem [thread:$0]  %s92_s1, 2048, %s94_s27, [#allocation15], %s2046_s21, %s2046_s21, %s2047_s22  }
   0xf   :  { %s2050_s11 = smov [#allocation17]   ;;  %s26_s14 = sshll.u32 %s2416_s0, 4  ;;  %s27_s14 = int_to_ptr.hbm [resolvable:$true] %s26_s14 }
  0x10   :  { %s119_s5 = sshll.u32 %s2050_s11, 4  ;;  %s2051_s15 = smov 16   ;;  %s120_s5 = int_to_ptr.vmem [resolvable:$true] %s119_s5 }
  0x11   :  { %s2052_s16 = smov 1   ;;  %s52_s7 = sshll.u32 %s2418_s2, 4  ;;  %s53_s7 = int_to_ptr.hbm [resolvable:$true] %s52_s7 }
  0x12   :  { %125 = dma.hbm_to_vmem [thread:$0]  %s118_s30, 128, %s120_s5, [#allocation18], %s2051_s15, %s2051_s15, %s2052_s16  }
  0x13   :  { %s2053_s19 = smov [#allocation5]   ;;  %s2054_s23 = smov [#allocation10]  }
  0x14   :  { %s28_s20 = sshll.u32 %s2053_s19, 4  ;;  %s54_s24 = sshll.u32 %s2054_s23, 4  ;;  %s29_s20 = int_to_ptr.vmem [resolvable:$true] %s28_s20  ;;  %s55_s24 = int_to_ptr.vmem [resolvable:$true] %s54_s24 }
  0x15   :  { %34 = dma.hbm_to_vmem [thread:$0]  %s27_s14, 1024, %s29_s20, [#allocation6], %s2046_s21, %s2046_s21, %s2047_s22  }
  0x16   :  { %s78_s26 = sshll.u32 %s2420_s4, 4  ;;  %s104_s2 = sshll.u32 %s2422_s6, 4  ;;  %s79_s26 = int_to_ptr.hbm [resolvable:$true] %s78_s26  ;;  %s105_s2 = int_to_ptr.hbm [resolvable:$true] %s104_s2 }
  0x17   :  { %60 = dma.hbm_to_vmem [thread:$0]  %s53_s7, 128, %s55_s24, [#allocation9], %s2051_s15, %s2051_s15, %s2052_s16  }
  0x18   :  { %s2055_s27 = smov [#allocation13]   ;;  %s2056_s29 = smov [#allocation16]  }
  0x19   :  { %s80_s28 = sshll.u32 %s2055_s27, 4  ;;  %s106_s30 = sshll.u32 %s2056_s29, 4  ;;  %s81_s28 = int_to_ptr.vmem [resolvable:$true] %s80_s28  ;;  %s107_s30 = int_to_ptr.vmem [resolvable:$true] %s106_s30 }
  0x1a   :  { %86 = dma.hbm_to_vmem [thread:$0]  %s79_s26, 4096, %s81_s28, [#allocation12], %s2046_s21, %s2046_s21, %s2047_s22  }
  0x1b   :  { %s130_s4 = sshll.u32 %s2424_s8, 4  ;;  %s143_s13 = sshll.u32 %s2425_s9, 4  ;;  %s131_s4 = int_to_ptr.hbm [resolvable:$true] %s130_s4  ;;  %s144_s13 = int_to_ptr.hbm [resolvable:$true] %s143_s13 }
  0x1c   :  { %112 = dma.hbm_to_vmem [thread:$0]  %s105_s2, 4096, %s107_s30, [#allocation15], %s2046_s21, %s2046_s21, %s2047_s22  }
  0x1d   :  { %s2057_s14 = smov [#allocation19]   ;;  %s2058_s16 = smov [#allocation20]  }
  0x1e   :  { %s132_s15 = sshll.u32 %s2057_s14, 4  ;;  %s145_s8 = sshll.u32 %s2058_s16, 4  ;;  %s133_s15 = int_to_ptr.vmem [resolvable:$true] %s132_s15  ;;  %s146_s8 = int_to_ptr.vmem [resolvable:$true] %s145_s8 }
  0x1f   :  { %138 = dma.hbm_to_vmem [thread:$0]  %s131_s4, 512, %s133_s15, [#allocation18], %s2046_s21, %s2046_s21, %s2047_s22  }
  0x20   :  { %151 = dma.hbm_to_vmem [thread:$0]  %s144_s13, 512, %s146_s8, [#allocation21], %s2046_s21, %s2046_s21, %s2047_s22  }
  0x21   :  { %2027 = dma.done.wait [#allocation6], 1024  }
  0x22   :  { %2028 = vsyncadd [#allocation6], 4294966272 }
  0x23   :  { %2029 = dma.done.wait [#allocation9], 2176  }
  0x24   :  { %2030 = vsyncadd [#allocation9], 4294965120 }
  0x25   :  { %2031 = dma.done.wait [#allocation12], 4608  }
  0x26   :  { %2032 = vsyncadd [#allocation12], 4294962688 }
  0x27   :  { %2033 = dma.done.wait [#allocation15], 6144  }
  0x28   :  { %2034 = vsyncadd [#allocation15], 4294961152 }
  0x29   :  { %2035 = dma.done.wait [#allocation18], 640  }
  0x2a   :  { %2036 = vsyncadd [#allocation18], 4294966656 }
  0x2b   :  { %2037 = dma.done.wait [#allocation21], 512  }
  0x2c   :  { %2038 = vsyncadd [#allocation21], 4294966784  ;;  %vm216_vm0 = vcmask 261120   ;;  %v2059_v0 = vmov 0.0   ;;  %v2175_v1 = vld [vmem:[#allocation8] sm:$0xff]  ;;  %v2177_v2 = vld [vmem:[#allocation8 + $0x8] sm:$0xff] }
  0x2d   :  { %217 = vst.msk [vmem:[#allocation2] sm:$0xff] %vm216_vm0, %v2059_v0  ;;  %v2179_v3 = vld [vmem:[#allocation8 + $0x10] sm:$0xff]  ;;  %v2181_v4 = vld [vmem:[#allocation8 + $0x18] sm:$0xff]  ;;  %v2183_v5 = vld [vmem:[#allocation8 + $0x20] sm:$0xff]  ;;  %s2223_s9 = smov 0  }
  0x2e   :  { %218 = vst.msk [vmem:[#allocation2 + $0x8] sm:$0xff] %vm216_vm0, %v2059_v0  ;;  %v2185_v6 = vld [vmem:[#allocation8 + $0x28] sm:$0xff]  ;;  %v2187_v7 = vld [vmem:[#allocation8 + $0x30] sm:$0xff]  ;;  %v2189_v8 = vld [vmem:[#allocation8 + $0x38] sm:$0xff] }
  0x2f   :  { %219 = vst.msk [vmem:[#allocation3] sm:$0xff] %vm216_vm0, %v2059_v0  ;;  %v2191_v9 = vld [vmem:[#allocation8 + $0x40] sm:$0xff]  ;;  %v2193_v10 = vld [vmem:[#allocation8 + $0x48] sm:$0xff]  ;;  %v2195_v11 = vld [vmem:[#allocation8 + $0x50] sm:$0xff] }
  0x30   :  { %220 = vst.msk [vmem:[#allocation3 + $0x8] sm:$0xff] %vm216_vm0, %v2059_v0  ;;  %v2197_v12 = vld [vmem:[#allocation8 + $0x58] sm:$0xff]  ;;  %v2199_v13 = vld [vmem:[#allocation8 + $0x60] sm:$0xff]  ;;  %v2201_v14 = vld [vmem:[#allocation8 + $0x68] sm:$0xff] }
  0x31   :  { %221 = vst.msk [vmem:[#allocation4] sm:$0xff] %vm216_vm0, %v2059_v0  ;;  %v2203_v15 = vld [vmem:[#allocation8 + $0x70] sm:$0xff]  ;;  %v2205_v16 = vld [vmem:[#allocation8 + $0x78] sm:$0xff]  ;;  %v2207_v17 = vld [vmem:[#allocation10] sm:$0x1] }
  0x32   :  { %v2209_v18 = vld [vmem:[#allocation10 + $0x1] sm:$0x1]  ;;  %v2211_v19 = vld [vmem:[#allocation10 + $0x2] sm:$0x1]  ;;  %v2213_v20 = vld [vmem:[#allocation10 + $0x3] sm:$0x1] }
  0x33   :  { %v2215_v21 = vld [vmem:[#allocation10 + $0x4] sm:$0x1]  ;;  %v2217_v22 = vld [vmem:[#allocation10 + $0x5] sm:$0x1]  ;;  %v2219_v23 = vld [vmem:[#allocation10 + $0x6] sm:$0x1] }
  0x34   :  { %v2221_v24 = vld [vmem:[#allocation10 + $0x7] sm:$0x1] }
  0x35 LB: > { %v241_v25 = vld [vmem:[#allocation14 + $0x18] sm:$0xff]  ;;  %v240_v28 = vld [vmem:[#allocation14 + $0x10] sm:$0xff]  ;;  %v239_v32 = vld [vmem:[#allocation14 + $0x8] sm:$0xff]  ;;  %s1597_s17 = sshll.u32 %s2043_s9, 3  ;;  %s227_s9 = sadd.s32 1, %s2043_s9   ;;  %s2043_s9 = sphi %s2223_s9, %s227_s9  }
  0x36   : > { %v291_v26 = vld [vmem:[#allocation16 + $0x18] sm:$0xff]  ;;  %257 = vmatpush.msra.mxu0 %v241_v25  ;;  %v290_v30 = vld [vmem:[#allocation16 + $0x10] sm:$0xff]  ;;  %v289_v34 = vld [vmem:[#allocation16 + $0x8] sm:$0xff]  ;;  %s229_s18 = scalar_lea.vmem [#allocation5], %s1597_s17  ;;  %s1562_s7 = scalar_lea.vmem [#allocation22], %s1597_s17 }
  0x37   : > { %v330_v27 = vld [vmem:[#allocation14 + $0x38] sm:$0xff]  ;;  %307 = vmatpush.msra.mxu2 %v291_v26  ;;  %v329_v31 = vld [vmem:[#allocation14 + $0x30] sm:$0xff]  ;;  %v328_v35 = vld [vmem:[#allocation14 + $0x28] sm:$0xff]  ;;  %p224_p0 = scmp.ge.s32.totalorder %s227_s9, 8  }
  0x38   : > { %v237_v29 = vld [vmem:[#allocation13 + $0x18] sm:$0xff]  ;;  %343 = vmatpush.msra.mxu3 %v330_v27  ;;  %v236_v33 = vld [vmem:[#allocation13 + $0x10] sm:$0xff]  ;;  %258 = vmatpush.msra.mxu0 %v240_v28  ;;  %v238_v36 = vld [vmem:[#allocation14] sm:$0xff]  ;;  %s1570_s23 = sshll.u32 (%p224_p0), %s2426_s10, 4  ;;  %s2060_s24 = smov (%p224_p0), [#allocation22]   ;;  %s1571_s23 = int_to_ptr.hbm [resolvable:$true] %s1570_s23 }
  0x39   : > { %280 = vmatpush.msra.mxu1 %v237_v29  ;;  %308 = vmatpush.msra.mxu2 %v290_v30  ;;  %v235_v37 = vld [vmem:[#allocation13 + $0x8] sm:$0xff]  ;;  %v288_v38 = vld [vmem:[#allocation16] sm:$0xff]  ;;  %v2229_v40 = vld [vmem:[#allocation4] sm:$0xff]  ;;  %s1568_s0 = sshll.u32 (%p224_p0), %s2060_s24, 4  ;;  %s1569_s0 = int_to_ptr.vmem [resolvable:$true] %s1568_s0 }
  0x3a   : > { %344 = vmatpush.msra.mxu3 %v329_v31  ;;  %259 = vmatpush.msra.mxu0 %v239_v32  ;;  %v327_v39 = vld [vmem:[#allocation14 + $0x20] sm:$0xff]  ;;  %v2231_v41 = vld [vmem:[#allocation2] sm:$0xff]  ;;  %v412_v42 = vld [vmem:[#allocation14 + $0x58] sm:$0xff] }
  0x3b   : > { %281 = vmatpush.msra.mxu1 %v236_v33  ;;  %309 = vmatpush.msra.mxu2 %v289_v34  ;;  %v234_v43 = vld [vmem:[#allocation13] sm:$0xff]  ;;  %v325_v44 = vld [vmem:[#allocation13 + $0x38] sm:$0xff]  ;;  %v2241_v46 = vld [vmem:[%s229_s18] sm:$0xff] }
  0x3c   : > { %345 = vmatpush.msra.mxu3 %v328_v35  ;;  %260 = vmatpush.msra.mxu0 %v238_v36  ;;  %v407_v45 = vld [vmem:[#allocation13 + $0x58] sm:$0xff]  ;;  %v411_v47 = vld [vmem:[#allocation14 + $0x50] sm:$0xff]  ;;  %v410_v51 = vld [vmem:[#allocation14 + $0x48] sm:$0xff] }
  0x3d   : > { %282 = vmatpush.msra.mxu1 %v235_v37  ;;  %310 = vmatpush.msra.mxu2 %v288_v38  ;;  %v324_v48 = vld [vmem:[#allocation13 + $0x30] sm:$0xff]  ;;  %v375_v49 = vld [vmem:[#allocation16 + $0x38] sm:$0xff]  ;;  %v323_v52 = vld [vmem:[#allocation13 + $0x28] sm:$0xff] }
  0x3e   : > { %346 = vmatpush.msra.mxu3 %v327_v39  ;;  %1598 = vmatmul.msk.f32.vlgmr.msra.gmra.mxu0 %vm216_vm0, %v2229_v40  ;;  %v406_v50 = vld [vmem:[#allocation13 + $0x50] sm:$0xff]  ;;  %v405_v54 = vld [vmem:[#allocation13 + $0x48] sm:$0xff]  ;;  %v409_v55 = vld [vmem:[#allocation14 + $0x40] sm:$0xff] }
  0x3f   : > { %1600 = vmatmul.msk.f32.vlgmr.msra.gmra.mxu2 %vm216_vm0, %v2231_v41  ;;  %1601 = vmatmul.msk.f32.vlgmr.msra.gmra.mxu3 %vm216_vm0, %v2229_v40  ;;  %v374_v53 = vld [vmem:[#allocation16 + $0x30] sm:$0xff]  ;;  %v322_v56 = vld [vmem:[#allocation13 + $0x20] sm:$0xff]  ;;  %v373_v57 = vld [vmem:[#allocation16 + $0x28] sm:$0xff] }
  0x40   : > { %425 = vmatpush.msrb.mxu2 %v412_v42  ;;  %283 = vmatpush.msra.mxu1 %v234_v43  ;;  %v404_v58 = vld [vmem:[#allocation13 + $0x40] sm:$0xff]  ;;  %v489_v59 = vld [vmem:[#allocation13 + $0x78] sm:$0xff]  ;;  %v488_v62 = vld [vmem:[#allocation13 + $0x70] sm:$0xff] }
  0x41   : > { %363 = vmatpush.msrb.mxu0 %v325_v44  ;;  %445 = vmatpush.msrb.mxu3 %v407_v45  ;;  %v372_v60 = vld [vmem:[#allocation16 + $0x20] sm:$0xff]  ;;  %v457_v61 = vld [vmem:[#allocation16 + $0x58] sm:$0xff]  ;;  %v456_v0 = vld [vmem:[#allocation16 + $0x50] sm:$0xff] }
  0x42   : > { %1599 = vmatmul.msk.f32.vlgmr.msra.gmra.mxu1 %vm216_vm0, %v2241_v46  ;;  %426 = vmatpush.msrb.mxu2 %v411_v47  ;;  %v539_v63 = vld [vmem:[#allocation16 + $0x78] sm:$0xff]  ;;  %v487_v26 = vld [vmem:[#allocation13 + $0x68] sm:$0xff]  ;;  %v538_v27 = vld [vmem:[#allocation16 + $0x70] sm:$0xff] }
  0x43   : > { %364 = vmatpush.msrb.mxu0 %v324_v48  ;;  %388 = vmatpush.msrb.mxu1 %v375_v49  ;;  %v494_v25 = vld [vmem:[#allocation14 + $0x78] sm:$0xff]  ;;  %v455_v28 = vld [vmem:[#allocation16 + $0x48] sm:$0xff]  ;;  %v493_v29 = vld [vmem:[#allocation14 + $0x70] sm:$0xff] }
  0x44   : > { %446 = vmatpush.msrb.mxu3 %v406_v50  ;;  %427 = vmatpush.msrb.mxu2 %v410_v51  ;;  %v486_v30 = vld [vmem:[#allocation13 + $0x60] sm:$0xff]  ;;  %v537_v31 = vld [vmem:[#allocation16 + $0x68] sm:$0xff] }
  0x45   : > { %365 = vmatpush.msrb.mxu0 %v323_v52  ;;  %389 = vmatpush.msrb.mxu1 %v374_v53  ;;  %v454_v32 = vld [vmem:[#allocation16 + $0x40] sm:$0xff]  ;;  %v492_v34 = vld [vmem:[#allocation14 + $0x68] sm:$0xff] }
  0x46   : > { %447 = vmatpush.msrb.mxu3 %v405_v54  ;;  %428 = vmatpush.msrb.mxu2 %v409_v55  ;;  %v536_v33 = vld [vmem:[#allocation16 + $0x60] sm:$0xff] }
  0x47   : > { %366 = vmatpush.msrb.mxu0 %v322_v56  ;;  %390 = vmatpush.msrb.mxu1 %v373_v57  ;;  %v491_v35 = vld [vmem:[#allocation14 + $0x60] sm:$0xff]  ;;  %v707_v56 = vld [vmem:[#allocation16 + $0xb8] sm:$0xff] }
  0x48   : > { %448 = vmatpush.msrb.mxu3 %v404_v58  ;;  %1602 = vmatmul.msk.f32.vlgmr.msrb.gmra.mxu0 %vm216_vm0, %v2241_v46  ;;  %v1683_v39 = vld [vmem:[#allocation17] ss:$0 sm:$0xff]  ;;  %v1684_v49 = vld [vmem:[#allocation17 + $0x1] ss:$0 sm:$0xff]  ;;  %v702_v57 = vld [vmem:[#allocation13 + $0xb8] sm:$0xff] }
  0x49   : > { %1604 = vmatmul.msk.f32.vlgmr.msrb.gmra.mxu2 %vm216_vm0, %v2229_v40  ;;  %1605 = vmatmul.msk.f32.vlgmr.msrb.gmra.mxu3 %vm216_vm0, %v2241_v46  ;;  %v645_v58 = vld [vmem:[#allocation16 + $0x98] sm:$0xff] }
  0x4a   : > { %527 = vmatpush.msra.mxu2 %v489_v59  ;;  %391 = vmatpush.msrb.mxu1 %v372_v60  ;;  %v640_v59 = vld [vmem:[#allocation13 + $0x98] sm:$0xff]  ;;  %v706_v60 = vld [vmem:[#allocation16 + $0xb0] sm:$0xff] }
  0x4b   : > { %470 = vmatpush.msra.mxu0 %v457_v61  ;;  %1603 = vmatmul.msk.f32.vlgmr.msrb.gmra.mxu1 %vm216_vm0, %v2231_v41  ;;  %v701_v61 = vld [vmem:[#allocation13 + $0xb0] sm:$0xff] }
  0x4c   : > { %528 = vmatpush.msra.mxu2 %v488_v62  ;;  %552 = vmatpush.msra.mxu3 %v539_v63  ;;  %v644_v63 = vld [vmem:[#allocation16 + $0x90] sm:$0xff] }
  0x4d   : > { %471 = vmatpush.msra.mxu0 %v456_v0  ;;  %507 = vmatpush.msra.mxu1 %v494_v25  ;;  %v639_v0 = vld [vmem:[#allocation13 + $0x90] sm:$0xff]  ;;  %v705_v25 = vld [vmem:[#allocation16 + $0xa8] sm:$0xff] }
  0x4e   : > { %529 = vmatpush.msra.mxu2 %v487_v26  ;;  %553 = vmatpush.msra.mxu3 %v538_v27  ;;  %v700_v27 = vld [vmem:[#allocation13 + $0xa8] sm:$0xff] }
  0x4f   : > { %472 = vmatpush.msra.mxu0 %v455_v28  ;;  %508 = vmatpush.msra.mxu1 %v493_v29  ;;  %v643_v28 = vld [vmem:[#allocation16 + $0x88] sm:$0xff] }
  0x50   : > { %530 = vmatpush.msra.mxu2 %v486_v30  ;;  %554 = vmatpush.msra.mxu3 %v537_v31  ;;  %v638_v29 = vld [vmem:[#allocation13 + $0x88] sm:$0xff] }
  0x51   : > { %473 = vmatpush.msra.mxu0 %v454_v32  ;;  %1608 = vmatmul.msk.f32.vlgmr.msra.gmra.mxu2 %vm216_vm0, %v2241_v46  ;;  %v1686_v32 = vld [vmem:[#allocation17 + $0x3] ss:$0 sm:$0xff] }
  0x52   : > { %1606 = vmatmul.msk.f32.vlgmr.msra.gmra.mxu0 %vm216_vm0, %v2231_v41  ;;  %555 = vmatpush.msra.mxu3 %v536_v33  ;;  %v704_v33 = vld [vmem:[#allocation16 + $0xa0] sm:$0xff] }
  0x53   : > { %509 = vmatpush.msra.mxu1 %v492_v34  ;;  %1609 = vmatmul.msk.f32.vlgmr.msra.gmra.mxu3 %vm216_vm0, %v2231_v41  ;;  %v699_v34 = vld [vmem:[#allocation13 + $0xa0] sm:$0xff] }
  0x54   : > { %720 = vmatpush.msrb.mxu2 %v707_v56  ;;  %740 = vmatpush.msrb.mxu3 %v702_v57  ;;  %v757_v56 = vld [vmem:[#allocation13 + $0xd0] sm:$0xff] }
  0x55   : > { %510 = vmatpush.msra.mxu1 %v491_v35  ;;  %661 = vmatpush.msrb.mxu0 %v645_v58  ;;  %v818_v57 = vld [vmem:[#allocation16 + $0xf0] sm:$0xff] }
  0x56   : > { %1607 = vmatmul.msk.f32.vlgmr.msra.gmra.mxu1 %vm216_vm0, %v2229_v40  ;;  %721 = vmatpush.msrb.mxu2 %v706_v60  ;;  %v813_v58 = vld [vmem:[#allocation13 + $0xf0] sm:$0xff]  ;;  %v756_v60 = vld [vmem:[#allocation13 + $0xc8] sm:$0xff] }
  0x57   : > { %684 = vmatpush.msrb.mxu1 %v640_v59  ;;  %741 = vmatpush.msrb.mxu3 %v701_v61  ;;  %v761_v59 = vld [vmem:[#allocation16 + $0xc8] sm:$0xff] }
  0x58   : > { %662 = vmatpush.msrb.mxu0 %v644_v63  ;;  %722 = vmatpush.msrb.mxu2 %v705_v25  ;;  %v812_v63 = vld [vmem:[#allocation13 + $0xe8] sm:$0xff] }
  0x59   : > { %685 = vmatpush.msrb.mxu1 %v639_v0  ;;  %742 = vmatpush.msrb.mxu3 %v700_v27  ;;  %v755_v27 = vld [vmem:[#allocation13 + $0xc0] sm:$0xff] }
  0x5a   : > { %663 = vmatpush.msrb.mxu0 %v643_v28  ;;  %723 = vmatpush.msrb.mxu2 %v704_v33 }
  0x5b   : > { %686 = vmatpush.msrb.mxu1 %v638_v29  ;;  %743 = vmatpush.msrb.mxu3 %v699_v34 }
  0xbb   : > { %v262_v36 = vpop.f32.mrf.mxu0 }
  0xbf   : > { %v285_v37 = vpop.f32.mrf.mxu1 }
  0xc0   : > { %v286_v38 = vadd.f32 %v285_v37, %v262_v36 }
  0xc2   : > { %v312_v42 = vpop.f32.mrf.mxu2  ;;  %v348_v44 = vpop.f32.mrf.mxu3 }
  0xc3   : > { %v315_v43 = vadd.f32 %v312_v42, %v286_v38  ;;  %v642_v38 = vld [vmem:[#allocation16 + $0x80] sm:$0xff] }
  0xc4   : > { %664 = vmatpush.msrb.mxu0 %v642_v38 }
  0xc5   : > { %v320_v45 = vadd.f32 %v1683_v39, %v315_v43  ;;  %v368_v46 = vpop.f32.mrf.mxu0  ;;  %v637_v39 = vld [vmem:[#allocation13 + $0x80] sm:$0xff] }
  0xc6   : > { %v369_v47 = vadd.f32 %v368_v46, %v348_v44  ;;  %v2266_v44 = vld [vmem:[#allocation2 + $0x8] sm:$0xff]  ;;  %687 = vmatpush.msrb.mxu1 %v637_v39 }
  0xc7   : > { %v1610_v48 = vmul.f32 -1.442695, %v320_v45  ;;  %1613 = vmatmul.msk.f32.vlgmr.msrb.gmra.mxu0 %vm216_vm0, %v2266_v44  ;;  %1615 = vmatmul.msk.f32.vlgmr.msrb.gmra.mxu2 %vm216_vm0, %v2266_v44 }
  0xc8   : > { %v393_v50 = vpop.f32.mrf.mxu1 }
  0xc9   : > { %1691 = vpow2.f32 %v1610_v48  ;;  %v396_v51 = vadd.f32 %v393_v50, %v369_v47  ;;  %v763_v48 = vld [vmem:[#allocation16 + $0xd8] sm:$0xff] }
  0xca   : > { %v819_v50 = vld [vmem:[#allocation16 + $0xf8] sm:$0xff]  ;;  %776 = vmatpush.msra.mxu0 %v763_v48 }
  0xcb   : > { %v402_v41 = vadd.f32 %v1684_v49, %v396_v51  ;;  %v758_v49 = vld [vmem:[#allocation13 + $0xd8] sm:$0xff]  ;;  %832 = vmatpush.msra.mxu2 %v819_v50 }
  0xcc   : > { %v430_v52 = vpop.f32.mrf.mxu2  ;;  %v450_v54 = vpop.f32.mrf.mxu3  ;;  %796 = vmatpush.msra.mxu1 %v758_v49 }
  0xcd   : > { %v1611_v53 = vmul.f32 -1.442695, %v402_v41  ;;  %v451_v36 = vadd.f32 %v450_v54, %v430_v52  ;;  %v1685_v41 = vld [vmem:[#allocation17 + $0x2] ss:$0 sm:$0xff]  ;;  %v814_v52 = vld [vmem:[#allocation13 + $0xf8] sm:$0xff]  ;;  %833 = vmatpush.msra.mxu2 %v818_v57 }
  0xce   : > { %852 = vmatpush.msra.mxu3 %v814_v52  ;;  %797 = vmatpush.msra.mxu1 %v757_v56 }
  0xcf   : > { %v1692_v40 = vpop.eup %1691  ;;  %1693 = vpow2.f32 %v1611_v53  ;;  %v475_v42 = vpop.f32.mrf.mxu0  ;;  %v762_v53 = vld [vmem:[#allocation16 + $0xd0] sm:$0xff] }
  0xd0   : > { %v2261_v55 = vadd.f32 1.0, %v1692_v40  ;;  %v478_v51 = vadd.f32 %v475_v42, %v451_v36  ;;  %777 = vmatpush.msra.mxu0 %v762_v53  ;;  %853 = vmatpush.msra.mxu3 %v813_v58 }
  0xd1   : > { %798 = vmatpush.msra.mxu1 %v756_v60 }
  0xd2   : > { %1695 = vrcp.f32 %v2261_v55  ;;  %v484_v25 = vadd.f32 %v1685_v41, %v478_v51  ;;  %778 = vmatpush.msra.mxu0 %v761_v59  ;;  %854 = vmatpush.msra.mxu3 %v812_v63  ;;  %vm576_vm2 = vweird.f32 %v2261_v55  ;;  %v580_v34 = vand.u32 2147483647, %v2261_v55 }
  0xd3   : > { %v512_v62 = vpop.f32.mrf.mxu1  ;;  %799 = vmatpush.msra.mxu1 %v755_v27 }
  0xd4   : > { %v532_v26 = vpop.f32.mrf.mxu2  ;;  %vm581_vm6 = vcmp.eq.f32.partialorder %v580_v34, 8.507059e+37 }
  0xd5   : > { %v1694_v30 = vpop.eup %1693  ;;  %v533_v31 = vadd.f32 %v532_v26, %v512_v62  ;;  %v817_v62 = vld [vmem:[#allocation16 + $0xe8] sm:$0xff]  ;;  %v760_v26 = vld [vmem:[#allocation16 + $0xc0] sm:$0xff] }
  0xd6   : > { %v2264_v35 = vadd.f32 1.0, %v1694_v30  ;;  %v557_v37 = vpop.f32.mrf.mxu3  ;;  %v816_v30 = vld [vmem:[#allocation16 + $0xe0] sm:$0xff]  ;;  %834 = vmatpush.msra.mxu2 %v817_v62  ;;  %779 = vmatpush.msra.mxu0 %v760_v26 }
  0xd7   : > { %v560_v43 = vadd.f32 %v557_v37, %v533_v31  ;;  %v811_v31 = vld [vmem:[#allocation13 + $0xe0] sm:$0xff]  ;;  %1617 = vmatmul.msk.f32.vlgmr.msra.gmra.mxu0 %vm216_vm0, %v2266_v44 }
  0xd8   : > { %v2268_v45 = vpop.eup %1695  ;;  %1697 = vrcp.f32 %v2264_v35  ;;  %v601_v36 = vand.u32 2147483648, %v2264_v35  ;;  %835 = vmatpush.msra.mxu2 %v816_v30  ;;  %855 = vmatpush.msra.mxu3 %v811_v31  ;;  %vm595_vm5 = vweird.f32 %v2264_v35  ;;  %v1687_v26 = vld [vmem:[#allocation17 + $0x4] ss:$0 sm:$0xff] }
  0xd9   : > { %v572_v46 = vmul.f32 %v2268_v45, %v2261_v55  ;;  %v566_v47 = vadd.f32 %v1686_v32, %v560_v43  ;;  %vm577_vm1 = vweird.f32 %v2268_v45  ;;  %v582_v32 = vand.u32 2147483648, %v2261_v55  ;;  %1619 = vmatmul.msk.f32.vlgmr.msra.gmra.mxu2 %vm216_vm0, %v2266_v44 }
  0xda   : > { %vm2285_vm3 = vmor %vm576_vm2, %vm577_vm1  ;;  %v599_v55 = vand.u32 2147483647, %v2264_v35  ;;  %1628 = vmatpush.xpose.msk.msrb.mxu2 %vm216_vm0, %v2181_v4  ;;  %v602_v48 = vor.u32 1.1754944e-38, %v601_v36 }
  0xdb   : > { %v573_v54 = vsub.f32 1.0, %v572_v46  ;;  %v1612_v40 = vmul.f32 -1.442695, %v566_v47  ;;  %v583_v43 = vor.u32 1.1754944e-38, %v582_v32  ;;  %v1688_v32 = vld [vmem:[#allocation17 + $0x5] ss:$0 sm:$0xff] }
  0xdc   : > { %vm600_vm8 = vcmp.eq.f32.partialorder %v599_v55, 8.507059e+37 }
  0xdd   : > { %v574_v61 = vmul.f32 %v2268_v45, %v573_v54  ;;  %1699 = vpow2.f32 %v1612_v40 }
  0xde   : > { %v1698_v0 = vpop.eup %1697  ;;  %1701 = vtanh.f32 %v484_v25  ;;  %1629 = vmatpush.xpose.msk.msrb.mxu2 %vm216_vm0, %v2179_v3 }
  0xdf   : > { %v591_v28 = vmul.f32 %v1698_v0, %v2264_v35  ;;  %v575_v29 = vadd.f32 %v2268_v45, %v574_v61  ;;  %vm596_vm4 = vweird.f32 %v1698_v0 }
  0xe0   : > { %vm597_vm7 = vmor %vm595_vm5, %vm596_vm4 }
  0xe1   : > { %v592_v33 = vsub.f32 1.0, %v591_v28  ;;  %v579_v42 = vsel %vm2285_vm3, %v2268_v45, %v575_v29  ;;  %v233_v45 = vld [vmem:[#allocation3] sm:$0xff] }
  0xe2   : > { %v584_v49 = vsel %vm581_vm6, %v583_v43, %v579_v42  ;;  %1640 = vmatpush.xpose.msk.msra.mxu2 %vm216_vm0, %v2197_v12  ;;  %v1690_v43 = vld [vmem:[#allocation17 + $0x7] ss:$0 sm:$0xff] }
  0xe3   : > { %v1700_v38 = vpop.eup %1699  ;;  %v593_v39 = vmul.f32 %v1698_v0, %v592_v33 }
  0xe4   : > { %v609_v46 = vadd.f32 1.0, %v1700_v38  ;;  %v1702_v51 = vpop.eup %1701  ;;  %v934_v38 = vld [vmem:[#allocation11 + $0x18] sm:$0xff] }
  0xe5   : > { %v594_v47 = vadd.f32 %v1698_v0, %v593_v39  ;;  %v626_v52 = vmul.f32 %v1702_v51, %v584_v49  ;;  %v933_v39 = vld [vmem:[#allocation11 + $0x10] sm:$0xff]  ;;  %950 = vmatpush.msrb.mxu0 %v934_v38  ;;  %v931_v49 = vld [vmem:[#allocation11] sm:$0xff] }
  0xe6   : > { %1703 = vrcp.f32 %v609_v46  ;;  %1641 = vmatpush.xpose.msk.msra.mxu2 %vm216_vm0, %v2195_v11  ;;  %v621_v56 = vand.u32 2147483648, %v609_v46  ;;  %v619_v58 = vand.u32 2147483647, %v609_v46  ;;  %vm615_vm10 = vweird.f32 %v609_v46 }
  0xe7   : > { %v598_v50 = vsel %vm597_vm7, %v1698_v0, %v594_v47  ;;  %951 = vmatpush.msrb.mxu0 %v933_v39 }
  0xe8   : > { %v603_v41 = vsel %vm600_vm8, %v602_v48, %v598_v50  ;;  %v622_v60 = vor.u32 1.1754944e-38, %v621_v56  ;;  %vm620_vm12 = vcmp.eq.f32.partialorder %v619_v58, 8.507059e+37  ;;  %v1689_v56 = vld [vmem:[#allocation17 + $0x6] ss:$0 sm:$0xff] }
  0xe9   : > { %v625_v44 = vmul.f32 %v603_v41, %v233_v45 }
  0xeb   : > { %v627_v35 = vadd.f32 %v626_v52, %v625_v44 }
  0xec   : > { %v1704_v53 = vpop.eup %1703 }
  0xed   : > { %631 = vst.msk [vmem:[#allocation3] sm:$0xff] %vm216_vm0, %v627_v35  ;;  %v611_v54 = vmul.f32 %v1704_v53, %v609_v46  ;;  %1705 = vtanh.f32 %v627_v35  ;;  %vm616_vm9 = vweird.f32 %v1704_v53  ;;  %v932_v46 = vld [vmem:[#allocation11 + $0x8] sm:$0xff] }
  0xee   : > { %vm617_vm11 = vmor %vm615_vm10, %vm616_vm9  ;;  %952 = vmatpush.msrb.mxu0 %v932_v46  ;;  %vm1190_vm10 = vcmask 122880  }
  0xef   : > { %v612_v40 = vsub.f32 1.0, %v611_v54 }
  0xf0   : > { %953 = vmatpush.msrb.mxu0 %v931_v49 }
  0xf1   : > { %v613_v57 = vmul.f32 %v1704_v53, %v612_v40 }
  0xf2   : > { %1634 = vmatpush.xpose.msk.msra.mxu0 %vm216_vm0, %v2189_v8 }
  0xf3   : > { %v614_v59 = vadd.f32 %v1704_v53, %v613_v57  ;;  %v1706_v62 = vpop.eup %1705 }
  0xf5   : > { %v618_v61 = vsel %vm617_vm11, %v1704_v53, %v614_v59  ;;  %vm1279_vm11 = vcmask 130048  }
  0xf6   : > { %v623_v63 = vsel %vm620_vm12, %v622_v60, %v618_v61  ;;  %1635 = vmatpush.xpose.msk.msra.mxu0 %vm216_vm0, %v2187_v7  ;;  %vm1481_vm12 = vcmask 1041409  }
  0xf7   : > { %v629_v0 = vmul.f32 %v1706_v62, %v623_v63 }
  0xf9   : > { %630 = vst.msk [vmem:[#allocation2] sm:$0xff] %vm216_vm0, %v629_v0  ;;  %1614 = vmatmul.msk.f32.vlgmr.msrb.gmra.mxu1 %vm216_vm0, %v629_v0  ;;  %1616 = vmatmul.msk.f32.vlgmr.msrb.gmra.mxu3 %vm216_vm0, %v629_v0 }
  0xfa   : > { %1625 = vmatpush.xpose.msk.msrb.mxu1 %vm216_vm0, %v2177_v2  ;;  %1631 = vmatpush.xpose.msk.msrb.mxu3 %vm216_vm0, %v2185_v6 }
  0xfe   : > { %1626 = vmatpush.xpose.msk.msrb.mxu1 %vm216_vm0, %v2175_v1  ;;  %1632 = vmatpush.xpose.msk.msrb.mxu3 %vm216_vm0, %v2183_v5 }
 0x101   : > { %1618 = vmatmul.msk.f32.vlgmr.msra.gmra.mxu1 %vm216_vm0, %v629_v0  ;;  %1620 = vmatmul.msk.f32.vlgmr.msra.gmra.mxu3 %vm216_vm0, %v629_v0 }
 0x102   : > { %1637 = vmatpush.xpose.msk.msra.mxu1 %vm216_vm0, %v2193_v10  ;;  %1643 = vmatpush.xpose.msk.msra.mxu3 %vm216_vm0, %v2201_v14 }
 0x106   : > { %1638 = vmatpush.xpose.msk.msra.mxu1 %vm216_vm0, %v2191_v9  ;;  %1644 = vmatpush.xpose.msk.msra.mxu3 %vm216_vm0, %v2199_v13 }
 0x144   : > { %v666_v25 = vpop.f32.mrf.mxu0 }
 0x14a   : > { %v725_v29 = vpop.f32.mrf.mxu2 }
 0x154   : > { %v781_v52 = vpop.f32.mrf.mxu0 }
 0x15c   : > { %v837_v42 = vpop.f32.mrf.mxu2 }
 0x176   : > { %v689_v27 = vpop.f32.mrf.mxu1 }
 0x177   : > { %v690_v28 = vadd.f32 %v689_v27, %v666_v25 }
 0x179   : > { %v697_v30 = vadd.f32 %v1687_v26, %v690_v28 }
 0x17b   : > { %v1621_v31 = vmul.f32 -1.442695, %v697_v30 }
 0x17c   : > { %v745_v33 = vpop.f32.mrf.mxu3 }
 0x17d   : > { %1707 = vpow2.f32 %v1621_v31  ;;  %v746_v34 = vadd.f32 %v745_v33, %v725_v29 }
 0x17e   : > { %v801_v35 = vpop.f32.mrf.mxu1 }
 0x17f   : > { %v753_v36 = vadd.f32 %v1688_v32, %v746_v34  ;;  %v802_v40 = vadd.f32 %v801_v35, %v781_v52 }
 0x181   : > { %v1622_v37 = vmul.f32 -1.442695, %v753_v36  ;;  %v809_v61 = vadd.f32 %v1689_v56, %v802_v40 }
 0x183   : > { %v1708_v55 = vpop.eup %1707  ;;  %1709 = vpow2.f32 %v1622_v37  ;;  %v635_v37 = vld [vmem:[#allocation3 + $0x8] sm:$0xff] }
 0x184   : > { %v869_v47 = vadd.f32 1.0, %v1708_v55  ;;  %v857_v48 = vpop.f32.mrf.mxu3 }
 0x185   : > { %v858_v45 = vadd.f32 %v857_v48, %v837_v42 }
 0x186   : > { %1711 = vrcp.f32 %v869_v47  ;;  %v881_v25 = vand.u32 2147483648, %v869_v47  ;;  %vm875_vm14 = vweird.f32 %v869_v47  ;;  %v879_v27 = vand.u32 2147483647, %v869_v47 }
 0x187   : > { %v865_v50 = vadd.f32 %v1690_v43, %v858_v45 }
 0x188   : > { %v882_v32 = vor.u32 1.1754944e-38, %v881_v25  ;;  %vm880_vm3 = vcmp.eq.f32.partialorder %v879_v27, 8.507059e+37 }
 0x189   : > { %v1710_v51 = vpop.eup %1709  ;;  %v1623_v41 = vmul.f32 -1.442695, %v865_v50 }
 0x18a   : > { %v888_v44 = vadd.f32 1.0, %v1710_v51 }
 0x18b   : > { %1713 = vpow2.f32 %v1623_v41 }
 0x18c   : > { %v1712_v53 = vpop.eup %1711  ;;  %1715 = vrcp.f32 %v888_v44  ;;  %v900_v28 = vand.u32 2147483648, %v888_v44  ;;  %v898_v31 = vand.u32 2147483647, %v888_v44  ;;  %vm894_vm2 = vweird.f32 %v888_v44 }
 0x18d   : > { %v871_v54 = vmul.f32 %v1712_v53, %v869_v47  ;;  %vm876_vm13 = vweird.f32 %v1712_v53 }
 0x18e   : > { %vm877_vm15 = vmor %vm875_vm14, %vm876_vm13  ;;  %v901_v36 = vor.u32 1.1754944e-38, %v900_v28  ;;  %vm899_vm5 = vcmp.eq.f32.partialorder %v898_v31, 8.507059e+37  ;;  %vm1484_vm13 = vcmask 1042434   ;;  %vm1487_vm14 = vcmask 1043459  }
 0x18f   : > { %v872_v57 = vsub.f32 1.0, %v871_v54 }
 0x191   : > { %v1714_v58 = vpop.eup %1713  ;;  %v873_v59 = vmul.f32 %v1712_v53, %v872_v57 }
 0x192   : > { %v1716_v60 = vpop.eup %1715  ;;  %v908_v62 = vadd.f32 1.0, %v1714_v58 }
 0x193   : > { %v890_v63 = vmul.f32 %v1716_v60, %v888_v44  ;;  %v874_v0 = vadd.f32 %v1712_v53, %v873_v59  ;;  %vm895_vm1 = vweird.f32 %v1716_v60 }
 0x194   : > { %1717 = vrcp.f32 %v908_v62  ;;  %vm896_vm4 = vmor %vm894_vm2, %vm895_vm1  ;;  %v920_v51 = vand.u32 2147483648, %v908_v62  ;;  %vm914_vm7 = vweird.f32 %v908_v62  ;;  %v918_v41 = vand.u32 2147483647, %v908_v62 }
 0x195   : > { %v891_v26 = vsub.f32 1.0, %v890_v63  ;;  %1719 = vtanh.f32 %v809_v61  ;;  %v878_v30 = vsel %vm877_vm15, %v1712_v53, %v874_v0  ;;  %vm1490_vm15 = vcmask 1044484  }
 0x196   : > { %v883_v38 = vsel %vm880_vm3, %v882_v32, %v878_v30  ;;  %v921_v52 = vor.u32 1.1754944e-38, %v920_v51  ;;  %vm919_vm9 = vcmp.eq.f32.partialorder %v918_v41, 8.507059e+37  ;;  %vm1493_vm1 = vcmask 1045509  }
 0x197   : > { %v892_v29 = vmul.f32 %v1716_v60, %v891_v26  ;;  %vm1496_vm2 = vcmask 1046534   ;;  %vm1499_vm3 = vcmask 1047559  }
 0x199   : > { %v893_v33 = vadd.f32 %v1716_v60, %v892_v29 }
 0x19a   : > { %v1718_v34 = vpop.eup %1717 }
 0x19b   : > { %v897_v39 = vsel %vm896_vm4, %v1716_v60, %v893_v33  ;;  %v910_v42 = vmul.f32 %v1718_v34, %v908_v62  ;;  %v1720_v55 = vpop.eup %1719  ;;  %vm915_vm6 = vweird.f32 %v1718_v34 }
 0x19c   : > { %v902_v43 = vsel %vm899_vm5, %v901_v36, %v897_v39  ;;  %v925_v47 = vmul.f32 %v1720_v55, %v883_v38  ;;  %vm916_vm8 = vmor %vm914_vm7, %vm915_vm6 }
 0x19d   : > { %v924_v46 = vmul.f32 %v902_v43, %v635_v37  ;;  %v911_v48 = vsub.f32 1.0, %v910_v42 }
 0x19f   : > { %v926_v45 = vadd.f32 %v925_v47, %v924_v46  ;;  %v912_v49 = vmul.f32 %v1718_v34, %v911_v48 }
 0x1a1   : > { %1721 = vtanh.f32 %v926_v45  ;;  %930 = vst.msk [vmem:[#allocation3 + $0x8] sm:$0xff] %vm216_vm0, %v926_v45  ;;  %v913_v50 = vadd.f32 %v1718_v34, %v912_v49 }
 0x1a3   : > { %v917_v44 = vsel %vm916_vm8, %v1718_v34, %v913_v50 }
 0x1a4   : > { %v922_v53 = vsel %vm919_vm9, %v921_v52, %v917_v44 }
 0x1a7   : > { %v1722_v35 = vpop.eup %1721 }
 0x1a8   : > { %v2333_v54 = vmul.f32 %v1722_v35, %v922_v53 }
 0x1aa   : > { %929 = vst.msk [vmem:[#allocation2 + $0x8] sm:$0xff] %vm216_vm0, %v2333_v54  ;;  %1624 = vmatmul.msk.f32.vlgmr.msrb.gmra.mxu0 %vm216_vm0, %v2333_v54 }
 0x1ab   : > { %1646 = vmatpush.xpose.msk.msrb.mxu0 %vm216_vm0, %v2205_v16 }
 0x1af   : > { %1647 = vmatpush.xpose.msk.msrb.mxu0 %vm216_vm0, %v2203_v15 }
 0x227   : > { %v955_v40 = vpop.f32.mrf.mxu0 }
 0x228   : > { %1627 = vmatmul.msk.f32.vlgmr.msrb.gmra.mxu1 %vm216_vm0, %v955_v40  ;;  %v959_v56 = vrot.slane %v955_v40, 1  ;;  %v960_v57 = vrot.slane %v955_v40, 2  ;;  %v961_v58 = vrot.slane %v955_v40, 3  ;;  %v962_v59 = vrot.slane %v955_v40, 4 }
 0x229   : > { %1297 = vmatpush.msrb.mxu1 %v2177_v2  ;;  %v963_v60 = vrot.slane %v955_v40, 5  ;;  %v964_v61 = vrot.slane %v955_v40, 6  ;;  %v965_v62 = vrot.slane %v955_v40, 7 }
 0x22a   : > { %1630 = vmatmul.msk.f32.vlgmr.msrb.gmra.mxu2 %vm216_vm0, %v959_v56  ;;  %1633 = vmatmul.msk.f32.vlgmr.msrb.gmra.mxu3 %vm216_vm0, %v960_v57 }
 0x22b   : > { %1636 = vmatmul.msk.f32.vlgmr.msra.gmra.mxu0 %vm216_vm0, %v961_v58  ;;  %1298 = vmatpush.msrb.mxu1 %v2175_v1 }
 0x22c   : > { %1320 = vmatpush.msrb.mxu2 %v2181_v4  ;;  %1343 = vmatpush.msrb.mxu3 %v2185_v6 }
 0x22d   : > { %1366 = vmatpush.msra.mxu0 %v2189_v8 }
 0x22e   : > { %1321 = vmatpush.msrb.mxu2 %v2179_v3  ;;  %1344 = vmatpush.msrb.mxu3 %v2183_v5 }
 0x22f   : > { %1367 = vmatpush.msra.mxu0 %v2187_v7 }
 0x230   : > { %1639 = vmatmul.msk.f32.vlgmr.msra.gmra.mxu1 %vm216_vm0, %v962_v59 }
 0x231   : > { %1389 = vmatpush.msra.mxu1 %v2193_v10 }
 0x232   : > { %1642 = vmatmul.msk.f32.vlgmr.msra.gmra.mxu2 %vm216_vm0, %v963_v60  ;;  %1645 = vmatmul.msk.f32.vlgmr.msra.gmra.mxu3 %vm216_vm0, %v964_v61 }
 0x233   : > { %1648 = vmatmul.msk.f32.vlgmr.msrb.gmra.mxu0 %vm216_vm0, %v965_v62  ;;  %1412 = vmatpush.msra.mxu2 %v2197_v12 }
 0x234   : > { %1435 = vmatpush.msra.mxu3 %v2201_v14  ;;  %1390 = vmatpush.msra.mxu1 %v2191_v9 }
 0x235   : > { %1413 = vmatpush.msra.mxu2 %v2195_v11  ;;  %1458 = vmatpush.msrb.mxu0 %v2205_v16 }
 0x236   : > { %1436 = vmatpush.msra.mxu3 %v2199_v13 }
 0x237   : > { %1459 = vmatpush.msrb.mxu0 %v2203_v15 }
 0x2a5   : > { %v991_v63 = vpop.f32.mrf.mxu1 }
 0x2a6   : > { %v992_v0 = vadd.f32 %v991_v63, %v2207_v17 }
 0x2a8   : > { %v1075_v25 = vpop.f32.mrf.mxu0  ;;  %v1191_v26 = vsel %vm1190_vm10, %v992_v0, -inf }
 0x2a9   : > { %1192 = vmax.xlane.f32.xlu1 %v1191_v26  ;;  %v1076_v27 = vadd.f32 %v1075_v25, %v2213_v20 }
 0x2ab   : > { %v1200_v31 = vsel %vm1190_vm10, %v1076_v27, -inf }
 0x2ad   : > { %v1019_v28 = vpop.f32.mrf.mxu2  ;;  %v1047_v30 = vpop.f32.mrf.mxu3 }
 0x2ae   : > { %v1020_v29 = vadd.f32 %v1019_v28, %v2209_v18  ;;  %v1048_v36 = vadd.f32 %v1047_v30, %v2211_v19  ;;  %v1103_v46 = vpop.f32.mrf.mxu1 }
 0x2af   : > { %v1104_v48 = vadd.f32 %v1103_v46, %v2215_v21 }
 0x2b0   : > { %v1194_v32 = vsel %vm1190_vm10, %v1020_v29, -inf  ;;  %v1187_v33 = vpop.f32.mrf.mxu0  ;;  %v1197_v43 = vsel %vm1190_vm10, %v1048_v36, -inf }
 0x2b1   : > { %1201 = vmax.xlane.f32.xlu1 %v1200_v31  ;;  %1195 = vmax.xlane.f32.xlu0 %v1194_v32  ;;  %v1188_v34 = vadd.f32 %v1187_v33, %v2221_v24  ;;  %v1203_v49 = vsel %vm1190_vm10, %v1104_v48, -inf }
 0x2b3   : > { %v1212_v39 = vsel %vm1190_vm10, %v1188_v34, -inf }
 0x2b5   : > { %v1131_v37 = vpop.f32.mrf.mxu2  ;;  %v1159_v55 = vpop.f32.mrf.mxu3 }
 0x2b6   : > { %v1132_v38 = vadd.f32 %v1131_v37, %v2217_v22  ;;  %v1160_v47 = vadd.f32 %v1159_v55, %v2219_v23 }
 0x2b8   : > { %v1206_v42 = vsel %vm1190_vm10, %v1132_v38, -inf  ;;  %v1209_v45 = vsel %vm1190_vm10, %v1160_v47, -inf }
 0x2b9   : > { %1213 = vmax.xlane.f32.xlu1 %v1212_v39  ;;  %1207 = vmax.xlane.f32.xlu2 %v1206_v42 }
 0x2ba   : > { %1198 = vmax.xlane.f32.xlu0 %v1197_v43 }
 0x2c1   : > { %1210 = vmax.xlane.f32.xlu2 %v1209_v45 }
 0x2c2   : > { %1204 = vmax.xlane.f32.xlu0 %v1203_v49 }
 0x31c   : > { %v1193_v50 = vpop.xlane.xlu1 %1192 }
 0x31d   : > { %v1215_v51 = vsub.f32 %v992_v0, %v1193_v50 }
 0x31f   : > { %v1223_v41 = vmul.f32 1.442695, %v1215_v51 }
 0x321   : > { %1723 = vpow2.f32 %v1223_v41 }
 0x324   : > { %v1196_v44 = vpop.xlane.xlu0 %1195  ;;  %v1202_v52 = vpop.xlane.xlu1 %1201 }
 0x325   : > { %v1216_v35 = vsub.f32 %v1020_v29, %v1196_v44  ;;  %v1218_v56 = vsub.f32 %v1076_v27, %v1202_v52 }
 0x327   : > { %v1724_v53 = vpop.eup %1723  ;;  %v1225_v40 = vmul.f32 1.442695, %v1216_v35  ;;  %v1229_v58 = vmul.f32 1.442695, %v1218_v56 }
 0x328   : > { %v1239_v57 = vsel %vm1190_vm10, %v1724_v53, 0.0 }
 0x329   : > { %1240 = vadd.xlane.f32.xlu1 %v1239_v57  ;;  %1725 = vpow2.f32 %v1225_v40  ;;  %v1467_v57 = vld [vmem:[#allocation19 + $0x18] sm:$0xff] }
 0x32a   : > { %1727 = vpow2.f32 %v1229_v58 }
 0x32c   : > { %v1208_v59 = vpop.xlane.xlu2 %1207  ;;  %v1214_v31 = vpop.xlane.xlu1 %1213 }
 0x32d   : > { %v1199_v60 = vpop.xlane.xlu0 %1198  ;;  %v1220_v63 = vsub.f32 %v1132_v38, %v1208_v59  ;;  %v1466_v59 = vld [vmem:[#allocation19 + $0x10] sm:$0xff] }
 0x32e   : > { %v1217_v61 = vsub.f32 %v1048_v36, %v1199_v60  ;;  %v1222_v36 = vsub.f32 %v1188_v34, %v1214_v31  ;;  %v1465_v60 = vld [vmem:[#allocation19 + $0x8] sm:$0xff] }
 0x32f   : > { %v1726_v62 = vpop.eup %1725  ;;  %v1233_v26 = vmul.f32 1.442695, %v1220_v63 }
 0x330   : > { %v1227_v0 = vmul.f32 1.442695, %v1217_v61  ;;  %v1242_v25 = vsel %vm1190_vm10, %v1726_v62, 0.0  ;;  %v1728_v30 = vpop.eup %1727  ;;  %v1237_v55 = vmul.f32 1.442695, %v1222_v36  ;;  %v1464_v61 = vld [vmem:[#allocation19] sm:$0xff] }
 0x331   : > { %1243 = vadd.xlane.f32.xlu2 %v1242_v25  ;;  %v1248_v38 = vsel %vm1190_vm10, %v1728_v30, 0.0 }
 0x332   : > { %1729 = vpow2.f32 %v1227_v0 }
 0x333   : > { %1731 = vpow2.f32 %v1233_v26 }
 0x334   : > { %v1211_v28 = vpop.xlane.xlu2 %1210 }
 0x335   : > { %v1221_v29 = vsub.f32 %v1160_v47, %v1211_v28  ;;  %v1205_v27 = vpop.xlane.xlu0 %1204 }
 0x336   : > { %v1219_v32 = vsub.f32 %v1104_v48, %v1205_v27 }
 0x337   : > { %v1235_v33 = vmul.f32 1.442695, %v1221_v29 }
 0x338   : > { %v1231_v37 = vmul.f32 1.442695, %v1219_v32  ;;  %v1730_v39 = vpop.eup %1729 }
 0x339   : > { %1733 = vpow2.f32 %v1235_v33  ;;  %1249 = vadd.xlane.f32.xlu2 %v1248_v38  ;;  %v1245_v42 = vsel %vm1190_vm10, %v1730_v39, 0.0  ;;  %v1732_v43 = vpop.eup %1731  ;;  %v1471_v38 = vld [vmem:[#allocation20 + $0x18] sm:$0xff] }
 0x33a   : > { %1735 = vpow2.f32 %v1231_v37  ;;  %1246 = vadd.xlane.f32.xlu0 %v1245_v42  ;;  %v1254_v34 = vsel %vm1190_vm10, %v1732_v43, 0.0  ;;  %v1470_v42 = vld [vmem:[#allocation20 + $0x10] sm:$0xff] }
 0x33b   : > { %1737 = vpow2.f32 %v1237_v55  ;;  %v1469_v55 = vld [vmem:[#allocation20 + $0x8] sm:$0xff] }
 0x33f   : > { %v1734_v46 = vpop.eup %1733 }
 0x340   : > { %v1736_v47 = vpop.eup %1735  ;;  %v1257_v45 = vsel %vm1190_vm10, %v1734_v46, 0.0 }
 0x341   : > { %1258 = vadd.xlane.f32.xlu1 %v1257_v45  ;;  %v1251_v48 = vsel %vm1190_vm10, %v1736_v47, 0.0  ;;  %v1738_v49 = vpop.eup %1737 }
 0x342   : > { %1252 = vadd.xlane.f32.xlu2 %v1251_v48  ;;  %1255 = vadd.xlane.f32.xlu0 %v1254_v34  ;;  %v1260_v50 = vsel %vm1190_vm10, %v1738_v49, 0.0 }
 0x34a   : > { %1261 = vadd.xlane.f32.xlu0 %v1260_v50 }
 0x39c   : > { %v1241_v51 = vpop.xlane.xlu1 %1240 }
 0x39d   : > { %1739 = vrcp.f32 %v1241_v51 }
 0x3a3   : > { %v1740_v41 = vpop.eup %1739 }
 0x3a4   : > { %v1271_v44 = vmul.f32 %v1740_v41, %v1724_v53  ;;  %v1244_v52 = vpop.xlane.xlu2 %1243 }
 0x3a5   : > { %1741 = vrcp.f32 %v1244_v52 }
 0x3a6   : > { %1649 = vmatmul.msk.f32.vlgmr.msrb.gmra.mxu1 %vm1279_vm11, %v1271_v44 }
 0x3a7   : > { %1515 = vmatpush.msrb.mxu1 %v1471_v38 }
 0x3a9   : > { %1516 = vmatpush.msrb.mxu1 %v1470_v42 }
 0x3ab   : > { %v1742_v35 = vpop.eup %1741  ;;  %1517 = vmatpush.msrb.mxu1 %v1469_v55 }
 0x3ac   : > { %v1272_v40 = vmul.f32 %v1742_v35, %v1726_v62  ;;  %v1250_v56 = vpop.xlane.xlu2 %1249 }
 0x3ad   : > { %1743 = vrcp.f32 %v1250_v56  ;;  %v1247_v58 = vpop.xlane.xlu0 %1246 }
 0x3ae   : > { %1745 = vrcp.f32 %v1247_v58  ;;  %1650 = vmatmul.msk.f32.vlgmr.msrb.gmra.mxu2 %vm1279_vm11, %v1272_v40 }
 0x3af   : > { %1535 = vmatpush.msrb.mxu2 %v1467_v57 }
 0x3b1   : > { %1536 = vmatpush.msrb.mxu2 %v1466_v59 }
 0x3b3   : > { %v1744_v63 = vpop.eup %1743  ;;  %1537 = vmatpush.msrb.mxu2 %v1465_v60 }
 0x3b4   : > { %v1259_v53 = vpop.xlane.xlu1 %1258  ;;  %v1746_v0 = vpop.eup %1745  ;;  %v1274_v25 = vmul.f32 %v1744_v63, %v1728_v30 }
 0x3b5   : > { %1747 = vrcp.f32 %v1259_v53  ;;  %v1253_v26 = vpop.xlane.xlu2 %1252  ;;  %v1273_v62 = vmul.f32 %v1746_v0, %v1730_v39  ;;  %v1256_v28 = vpop.xlane.xlu0 %1255  ;;  %1538 = vmatpush.msrb.mxu2 %v1464_v61 }
 0x3b6   : > { %1749 = vrcp.f32 %v1253_v26  ;;  %1652 = vmatmul.msk.f32.vlgmr.msra.gmra.mxu0 %vm1279_vm11, %v1274_v25 }
 0x3b7   : > { %1751 = vrcp.f32 %v1256_v28  ;;  %1651 = vmatmul.msk.f32.vlgmr.msrb.gmra.mxu3 %vm1279_vm11, %v1273_v62 }
 0x3bb   : > { %v1748_v29 = vpop.eup %1747 }
 0x3bc   : > { %v1750_v27 = vpop.eup %1749  ;;  %v1277_v31 = vmul.f32 %v1748_v29, %v1734_v46 }
 0x3bd   : > { %v1752_v32 = vpop.eup %1751  ;;  %v1275_v33 = vmul.f32 %v1750_v27, %v1736_v47  ;;  %v1262_v36 = vpop.xlane.xlu0 %1261 }
 0x3be   : > { %v1276_v37 = vmul.f32 %v1752_v32, %v1732_v43  ;;  %1753 = vrcp.f32 %v1262_v36  ;;  %v1468_v43 = vld [vmem:[#allocation20] sm:$0xff] }
 0x3bf   : > { %1653 = vmatmul.msk.f32.vlgmr.msra.gmra.mxu1 %vm1279_vm11, %v1275_v33  ;;  %1655 = vmatmul.msk.f32.vlgmr.msra.gmra.mxu3 %vm1279_vm11, %v1277_v31 }
 0x3c0   : > { %1654 = vmatmul.msk.f32.vlgmr.msra.gmra.mxu2 %vm1279_vm11, %v1276_v37  ;;  %1518 = vmatpush.msrb.mxu1 %v1468_v43 }
 0x3c4   : > { %v1754_v30 = vpop.eup %1753 }
 0x3c5   : > { %v1278_v39 = vmul.f32 %v1754_v30, %v1738_v49 }
 0x3c7   : > { %1656 = vmatmul.msk.f32.vlgmr.msrb.gmra.mxu0 %vm1279_vm11, %v1278_v39 }
 0x3c8   : > { %1658 = vmatmul.msk.f32.vlgmr.msrb.gmra.mxu2 %vm216_vm0, %v2333_v54 }
 0x423   : > { %v1300_v46 = vpop.f32.mrf.mxu1 }
 0x431   : > { %v1323_v47 = vpop.f32.mrf.mxu2 }
 0x432   : > { %v1480_v45 = vrot.slane %v1323_v47, 7 }
 0x433   : > { %v1369_v49 = vpop.f32.mrf.mxu0 }
 0x434   : > { %v1482_v50 = vsel %vm1481_vm12, %v1480_v45, %v1300_v46  ;;  %v1486_v54 = vrot.slane %v1369_v49, 5 }
 0x43a   : > { %v1346_v48 = vpop.f32.mrf.mxu3 }
 0x43b   : > { %v1483_v34 = vrot.slane %v1346_v48, 6 }
 0x43c   : > { %v1392_v51 = vpop.f32.mrf.mxu1 }
 0x43d   : > { %v1485_v41 = vsel %vm1484_vm13, %v1483_v34, %v1482_v50  ;;  %v1489_v44 = vrot.slane %v1392_v51, 4 }
 0x43e   : > { %v1488_v52 = vsel %vm1487_vm14, %v1486_v54, %v1485_v41 }
 0x43f   : > { %v1491_v58 = vsel %vm1490_vm15, %v1489_v44, %v1488_v52 }
 0x442   : > { %v1438_v40 = vpop.f32.mrf.mxu3 }
 0x443   : > { %v1415_v35 = vpop.f32.mrf.mxu2  ;;  %v1495_v57 = vrot.slane %v1438_v40, 2 }
 0x444   : > { %v1492_v56 = vrot.slane %v1415_v35, 3  ;;  %v1461_v59 = vpop.f32.mrf.mxu0 }
 0x445   : > { %v1498_v61 = vrot.slane %v1461_v59, 1 }
 0x446   : > { %v1494_v60 = vsel %vm1493_vm1, %v1492_v56, %v1491_v58 }
 0x447   : > { %v1497_v63 = vsel %vm1496_vm2, %v1495_v57, %v1494_v60 }
 0x448   : > { %v1500_v53 = vsel %vm1499_vm3, %v1498_v61, %v1497_v63 }
 0x449   : > { %1657 = vmatmul.msk.f32.vlgmr.msrb.gmra.mxu1 %vm216_vm0, %v1500_v53 }
 0x44b   : > { %v1540_v0 = vpop.f32.mrf.mxu2 }
 0x4c6   : > { %v1520_v25 = vpop.f32.mrf.mxu1 }
 0x4c7   : > { %v1541_v26 = vadd.f32 %v1540_v0, %v1520_v25 }
 0x4c9   : > { %1755 = vtanh.f32 %v1541_v26 }
 0x4cf   : > { %v1756_v62 = vpop.eup %1755 }
 0x4d0   : > { %1544 = vst.msk [vmem:[#allocation4] sm:$0xff] %vm216_vm0, %v1756_v62  ;;  %v1545_v28 = vmul.f32 %v1756_v62, %v1756_v62 }
 0x4d2   : > { %v1546_v29 = vsel %vm216_vm0, %v1545_v28, 0.0 }
 0x4d3   : > { %1547 = vadd.xlane.f32.xlu1 %v1546_v29 }
 0x546   : > { %v1548_v27 = vpop.xlane.xlu1 %1547 }
 0x547   : > { %v1549_v31 = vmax.f32 %v1548_v27, 1e-10 }
 0x549   : > { %1757 = vrsqrt.f32 %v1549_v31  ;;  %vm1556_vm5 = vweird.f32 %v1549_v31 }
 0x54f   : > { %v1758_v32 = vpop.eup %1757 }
 0x550   : > { %v1551_v33 = vmul.f32 %v1758_v32, %v1549_v31  ;;  %vm1557_vm4 = vweird.f32 %v1758_v32 }
 0x551   : > { %vm1558_vm6 = vmor %vm1556_vm5, %vm1557_vm4 }
 0x552   : > { %v1552_v37 = vmul.f32 %v1758_v32, %v1551_v33 }
 0x554   : > { %v1553_v36 = vmul.f32 0.5, %v1552_v37 }
 0x556   : > { %v1554_v30 = vsub.f32 1.5, %v1553_v36 }
 0x558   : > { %v1555_v39 = vmul.f32 %v1758_v32, %v1554_v30 }
 0x55a   : > { %v1559_v38 = vsel %vm1558_vm6, %v1758_v32, %v1555_v39 }
 0x55b   : > { %v1560_v42 = vmul.f32 5.656854, %v1559_v38  ;;  %226 = sbr.rel (!%p224_p0) target bundleno = 53 (0x35), region = 135 }
 0x55d   : > { %v1561_v55 = vmul.f32 %v1756_v62, %v1560_v42 }
 0x55f   : > { %1563 = vst.msk [vmem:[%s1562_s7] sm:$0xff] %vm216_vm0, %v1561_v55 }
 0x560   :  { %1576 = dma.vmem_to_hbm [thread:$0]  %s1569_s0, 1024, %s1571_s23, [#allocation7], %s2046_s21, %s2046_s21, %s2047_s22  }
 0x561   :  { %2039 = dma.done.wait [#allocation7], 1024  }
 0x562   :  { %2040 = vsyncadd [#allocation7], 4294966272 }
 0x563   :  { %1581 = vsyncpa [#allocation6], 1 }
 0x564   :  { %1582 = vsyncpa [#allocation9], 1 }
 0x565   :  { %1583 = vsyncpa [#allocation12], 1 }
 0x566   :  { %1584 = vsyncpa [#allocation15], 1 }
 0x567   :  { %1585 = vsyncpa [#allocation18], 1 }
 0x568   :  { %1586 = vsyncpa [#allocation21], 1 }
 0x569   :  { %1587 = vsyncpa [#allocation7], 1 }

</bundles_post_ra>
